<compile_context>
chip_gen: v6e
topology: v6e:2x2x1
jax: 0.10.0
libtpu: 0.0.40
codegen_flags: <defaults>
</compile_context>

<pallas_src>
import functools
import math

import jax
import jax.numpy as jnp
import numpy as np
from jax.experimental import pallas as pl
from jax.experimental.pallas import tpu as pltpu

EPS = 1e-5  # nn.LayerNorm default eps

PARAM_NAMES = ("ln_g", "ln_b", "wq", "bq", "wk", "bk", "wv", "bv", "wh", "bh")


def esa_kernel(x_ref, mask_ref,
               ln_g_ref, ln_b_ref,
               wq_ref, bq_ref, wk_ref, bk_ref, wv_ref, bv_ref,
               wh_ref, bh_ref,
               o_ref, *, compute_dtype):
    Bt, T, D = x_ref.shape
    cd = compute_dtype
    approx_recip = jnp.dtype(cd) == jnp.dtype(jnp.bfloat16)

    x = x_ref[...].astype(jnp.float32)          # (Bt, T, D)
    x2 = x.reshape(Bt * T, D)                   # row-wise ops on the flattened slab

    # ---------------- LayerNorm (f32 statistics) ----------------
    mu = jnp.mean(x2, axis=-1, keepdims=True)
    var = jnp.mean(jnp.square(x2 - mu), axis=-1, keepdims=True)
    nx = (x2 - mu) * jax.lax.rsqrt(var + EPS) * ln_g_ref[...] + ln_b_ref[...]

    nx_c = nx.astype(cd)
    mask = mask_ref[...]                        # (D, D) block-diagonal 0/1, compute dtype

    # ---------------- q / k / v / highway: full-width MXU matmuls ----------------
    q = jnp.dot(nx_c, wq_ref[...], preferred_element_type=jnp.float32) + bq_ref[...]
    k = jnp.dot(nx_c, wk_ref[...], preferred_element_type=jnp.float32) + bk_ref[...]
    v = jnp.dot(nx_c, wv_ref[...], preferred_element_type=jnp.float32) + bv_ref[...]
    hw = jnp.dot(x2.astype(cd), wh_ref[...], preferred_element_type=jnp.float32) + bh_ref[...]

    # ---------------- lane-dense per-head softmax ----------------
    # The full-row max over D is a constant shift within every head segment of that row,
    # so the per-head softmax is unchanged; per-head denominators come from one matmul
    # against the block-diagonal ones mask (broadcast back across each head's lanes).
    def head_softmax(a):                        # a: (Bt*T, D), f32
        m = jnp.max(a, axis=-1, keepdims=True)
        e = jnp.exp(a - m)
        denom = jnp.dot(e.astype(cd), mask, preferred_element_type=jnp.float32)
        return e * pl.reciprocal(denom, approx=approx_recip)

    qs = head_softmax(q).reshape(Bt, T, D).astype(cd)
    ks = head_softmax(k).reshape(Bt, T, D).astype(cd)
    v3 = v.reshape(Bt, T, D).astype(cd)

    # ---------------- efficient attention: two full-D batched MXU matmuls ----------------
    # att[b] = ks[b]^T @ v[b]  (D, D); block-diag mask keeps the per-head structure.
    att = jax.lax.dot_general(ks, v3, (((1,), (1,)), ((0,), (0,))),
                              preferred_element_type=jnp.float32)      # (Bt, D, D)
    att = (att * mask.astype(jnp.float32)).astype(cd)
    y_attn = jax.lax.dot_general(qs, att, (((2,), (1,)), ((0,), (0,))),
                                 preferred_element_type=jnp.float32)   # (Bt, T, D)

    out = hw.reshape(Bt, T, D) + y_attn
    o_ref[...] = out.astype(o_ref.dtype)


def efficient_self_attention(x, params, nhead, *,
                             compute_dtype=jnp.bfloat16, block_b=None):
    """EfficientSelfAttention.forward as a single Pallas TPU kernel (eval mode)."""
    B, T, D = x.shape
    if D % nhead != 0:
        raise ValueError(f"embed_dim {D} must be divisible by nhead {nhead}")
    dh = D // nhead

    if block_b is None:
        # Even number of grid steps (2 TensorCores on v7x) while keeping blocks large.
        block_b = B // 2 if (B % 2 == 0 and B >= 2) else B
    if B % block_b != 0:
        raise ValueError(f"batch {B} must be divisible by block_b {block_b}")

    cd = compute_dtype

    # Precomputed block-diagonal head mask (hoisted out of the kernel body).
    head_id = np.arange(D) // dh
    mask = jnp.asarray((head_id[:, None] == head_id[None, :]).astype(np.float32)).astype(cd)

    # Matmul weights in the compute dtype (halves weight HBM traffic / VMEM in bf16);
    # biases and LayerNorm params stay f32 (added to f32 accumulators).
    args = [x, mask,
            params["ln_g"], params["ln_b"],
            params["wq"].astype(cd), params["bq"],
            params["wk"].astype(cd), params["bk"],
            params["wv"].astype(cd), params["bv"],
            params["wh"].astype(cd), params["bh"]]

    act_spec = pl.BlockSpec((block_b, T, D), lambda b: (b, 0, 0))
    in_specs = [act_spec]
    in_specs += [pl.BlockSpec(a.shape, lambda b: (0, 0)) for a in args[1:]]

    return pl.pallas_call(
        functools.partial(esa_kernel, compute_dtype=cd),
        out_shape=jax.ShapeDtypeStruct((B, T, D), x.dtype),
        grid=(B // block_b,),
        in_specs=in_specs,
        out_specs=act_spec,
        compiler_params=pltpu.CompilerParams(
            dimension_semantics=("parallel",),
            vmem_limit_bytes=64 * 1024 * 1024),
    )(*args)


# ---------------- deterministic parameter init (mirrors nn.Linear defaults) ----------------
def _init_linear(key, fan_in, fan_out):
    kw, kb = jax.random.split(key)
    bound = 1.0 / math.sqrt(fan_in)
    w = jax.random.uniform(kw, (fan_in, fan_out), jnp.float32, -bound, bound)
    b = jax.random.uniform(kb, (1, fan_out), jnp.float32, -bound, bound)
    return w, b


def init_params(key, embed_dim):
    ks = jax.random.split(key, 4)
    p = {"ln_g": jnp.ones((1, embed_dim), jnp.float32),
         "ln_b": jnp.zeros((1, embed_dim), jnp.float32)}
    p["wq"], p["bq"] = _init_linear(ks[0], embed_dim, embed_dim)
    p["wk"], p["bk"] = _init_linear(ks[1], embed_dim, embed_dim)
    p["wv"], p["bv"] = _init_linear(ks[2], embed_dim, embed_dim)
    p["wh"], p["bh"] = _init_linear(ks[3], embed_dim, embed_dim)
    return p


# ---------------- pure-JAX reference (mirrors the PyTorch forward) ----------------
def _ref_esa(x, p, nhead):
    B, T, D = x.shape
    dh = D // nhead
    mu = jnp.mean(x, axis=-1, keepdims=True)
    var = jnp.mean(jnp.square(x - mu), axis=-1, keepdims=True)
    nx = (x - mu) / jnp.sqrt(var + EPS) * p["ln_g"][0] + p["ln_b"][0]
    q = (nx @ p["wq"] + p["bq"]).reshape(B, T, nhead, dh)
    k = (nx @ p["wk"] + p["bk"]).reshape(B, T, nhead, dh)
    v = (nx @ p["wv"] + p["bv"]).reshape(B, T, nhead, dh)
    q = jax.nn.softmax(q, axis=-1)
    k = jax.nn.softmax(k, axis=-1)
    att = jnp.einsum("bnhd,bnhl->bhdl", k, v)       # dropout = identity (eval)
    y = jnp.einsum("bnhd,bhdl->bnhl", q, att).reshape(B, T, D)
    return (x @ p["wh"] + p["bh"]) + y


if __name__ == "__main__":
    # Small, hardware-aligned shapes: D multiple of 128 (lane-dense), T multiple of 8.
    B, T, D, nhead = 4, 16, 128, 8

    root = jax.random.PRNGKey(0)
    k_x, k_p = jax.random.split(root)
    x = jax.random.normal(k_x, (B, T, D), jnp.float32)
    params = init_params(k_p, D)

    ref = _ref_esa(x, params, nhead)

    # f32 compute path (accuracy check of the restructured algorithm).
    out_f32 = efficient_self_attention(x, params, nhead, compute_dtype=jnp.float32)
    out_f32 = jax.block_until_ready(out_f32)
    np.testing.assert_allclose(np.asarray(out_f32), np.asarray(ref), rtol=1e-2, atol=1e-2)

    # Default bf16 MXU path (production configuration), looser tolerance.
    out_bf16 = efficient_self_attention(x, params, nhead)
    out_bf16 = jax.block_until_ready(out_bf16)
    np.testing.assert_allclose(np.asarray(out_bf16), np.asarray(ref), rtol=5e-2, atol=5e-2)

    print("KERNEL_OK")
</pallas_src>

<mosaic_0001>
module attributes {stable_mosaic.version = 11 : i64} {
  func.func @esa_kernel(%arg0: i32, %arg1: memref<2x16x128xf32, #tpu.memory_space<vmem>>, %arg2: memref<128x128xf32, #tpu.memory_space<vmem>>, %arg3: memref<1x128xf32, #tpu.memory_space<vmem>>, %arg4: memref<1x128xf32, #tpu.memory_space<vmem>>, %arg5: memref<128x128xf32, #tpu.memory_space<vmem>>, %arg6: memref<1x128xf32, #tpu.memory_space<vmem>>, %arg7: memref<128x128xf32, #tpu.memory_space<vmem>>, %arg8: memref<1x128xf32, #tpu.memory_space<vmem>>, %arg9: memref<128x128xf32, #tpu.memory_space<vmem>>, %arg10: memref<1x128xf32, #tpu.memory_space<vmem>>, %arg11: memref<128x128xf32, #tpu.memory_space<vmem>>, %arg12: memref<1x128xf32, #tpu.memory_space<vmem>>, %arg13: memref<2x16x128xf32, #tpu.memory_space<vmem>>) attributes {dimension_semantics = [#tpu.dimension_semantics<parallel>], iteration_bounds = array<i64: 2>, scalar_prefetch = 0 : i64, scratch_operands = 0 : i64, tpu.core_type = #tpu.core_type<tc>, window_params = [{transform_indices = @transform_0, window_bounds = array<i64: 2, 16, 128>}, {pipeline_mode = #tpu.pipeline_mode<synchronous>, transform_indices = @transform_1, window_bounds = array<i64: 128, 128>}, {pipeline_mode = #tpu.pipeline_mode<synchronous>, transform_indices = @transform_2, window_bounds = array<i64: 1, 128>}, {pipeline_mode = #tpu.pipeline_mode<synchronous>, transform_indices = @transform_3, window_bounds = array<i64: 1, 128>}, {pipeline_mode = #tpu.pipeline_mode<synchronous>, transform_indices = @transform_4, window_bounds = array<i64: 128, 128>}, {pipeline_mode = #tpu.pipeline_mode<synchronous>, transform_indices = @transform_5, window_bounds = array<i64: 1, 128>}, {pipeline_mode = #tpu.pipeline_mode<synchronous>, transform_indices = @transform_6, window_bounds = array<i64: 128, 128>}, {pipeline_mode = #tpu.pipeline_mode<synchronous>, transform_indices = @transform_7, window_bounds = array<i64: 1, 128>}, {pipeline_mode = #tpu.pipeline_mode<synchronous>, transform_indices = @transform_8, window_bounds = array<i64: 128, 128>}, {pipeline_mode = #tpu.pipeline_mode<synchronous>, transform_indices = @transform_9, window_bounds = array<i64: 1, 128>}, {pipeline_mode = #tpu.pipeline_mode<synchronous>, transform_indices = @transform_10, window_bounds = array<i64: 128, 128>}, {pipeline_mode = #tpu.pipeline_mode<synchronous>, transform_indices = @transform_11, window_bounds = array<i64: 1, 128>}, {transform_indices = @transform_12, window_bounds = array<i64: 2, 16, 128>}]} {
    %c0 = arith.constant 0 : index
    %c0_0 = arith.constant 0 : index
    %c0_1 = arith.constant 0 : index
    %0 = vector.load %arg1[%c0, %c0_0, %c0_1] : memref<2x16x128xf32, #tpu.memory_space<vmem>>, vector<2x16x128xf32>
    %1 = vector.shape_cast %0 : vector<2x16x128xf32> to vector<32x128xf32>
    %cst = arith.constant dense<0.000000e+00> : vector<32xf32>
    %2 = vector.multi_reduction <add>, %1, %cst [1] : vector<32x128xf32> to vector<32xf32>
    %3 = vector.shape_cast %2 : vector<32xf32> to vector<32x1xf32>
    %cst_2 = arith.constant 1.280000e+02 : f32
    %4 = vector.broadcast %cst_2 : f32 to vector<32x1xf32>
    %5 = arith.divf %3, %4 : vector<32x1xf32>
    %6 = vector.broadcast %5 : vector<32x1xf32> to vector<32x128xf32>
    %7 = arith.subf %1, %6 : vector<32x128xf32>
    %8 = arith.mulf %7, %7 : vector<32x128xf32>
    %cst_3 = arith.constant dense<0.000000e+00> : vector<32xf32>
    %9 = vector.multi_reduction <add>, %8, %cst_3 [1] : vector<32x128xf32> to vector<32xf32>
    %10 = vector.shape_cast %9 : vector<32xf32> to vector<32x1xf32>
    %cst_4 = arith.constant 1.280000e+02 : f32
    %11 = vector.broadcast %cst_4 : f32 to vector<32x1xf32>
    %12 = arith.divf %10, %11 : vector<32x1xf32>
    %13 = vector.broadcast %5 : vector<32x1xf32> to vector<32x128xf32>
    %14 = arith.subf %1, %13 : vector<32x128xf32>
    %cst_5 = arith.constant 9.99999974E-6 : f32
    %15 = vector.broadcast %cst_5 : f32 to vector<32x1xf32>
    %16 = arith.addf %12, %15 : vector<32x1xf32>
    %17 = math.rsqrt %16 : vector<32x1xf32>
    %18 = vector.broadcast %17 : vector<32x1xf32> to vector<32x128xf32>
    %19 = arith.mulf %14, %18 : vector<32x128xf32>
    %c0_6 = arith.constant 0 : index
    %c0_7 = arith.constant 0 : index
    %20 = vector.load %arg3[%c0_6, %c0_7] : memref<1x128xf32, #tpu.memory_space<vmem>>, vector<1x128xf32>
    %21 = vector.broadcast %20 : vector<1x128xf32> to vector<32x128xf32>
    %22 = arith.mulf %19, %21 : vector<32x128xf32>
    %c0_8 = arith.constant 0 : index
    %c0_9 = arith.constant 0 : index
    %23 = vector.load %arg4[%c0_8, %c0_9] : memref<1x128xf32, #tpu.memory_space<vmem>>, vector<1x128xf32>
    %24 = vector.broadcast %23 : vector<1x128xf32> to vector<32x128xf32>
    %25 = arith.addf %22, %24 : vector<32x128xf32>
    %c0_10 = arith.constant 0 : index
    %c0_11 = arith.constant 0 : index
    %26 = vector.load %arg2[%c0_10, %c0_11] : memref<128x128xf32, #tpu.memory_space<vmem>>, vector<128x128xf32>
    %c0_12 = arith.constant 0 : index
    %c0_13 = arith.constant 0 : index
    %27 = vector.load %arg5[%c0_12, %c0_13] : memref<128x128xf32, #tpu.memory_space<vmem>>, vector<128x128xf32>
    %cst_14 = arith.constant dense<0.000000e+00> : vector<32x128xf32>
    %28 = tpu.matmul %25, %27, %cst_14 {dimension_numbers = #tpu.dot_dimension_numbers<[1], [0], [0], [1], [0, 0, 1, 1], [], []>} : vector<32x128xf32>, vector<128x128xf32>, vector<32x128xf32> -> vector<32x128xf32>
    %c0_15 = arith.constant 0 : index
    %c0_16 = arith.constant 0 : index
    %29 = vector.load %arg6[%c0_15, %c0_16] : memref<1x128xf32, #tpu.memory_space<vmem>>, vector<1x128xf32>
    %30 = vector.broadcast %29 : vector<1x128xf32> to vector<32x128xf32>
    %31 = arith.addf %28, %30 : vector<32x128xf32>
    %c0_17 = arith.constant 0 : index
    %c0_18 = arith.constant 0 : index
    %32 = vector.load %arg7[%c0_17, %c0_18] : memref<128x128xf32, #tpu.memory_space<vmem>>, vector<128x128xf32>
    %cst_19 = arith.constant dense<0.000000e+00> : vector<32x128xf32>
    %33 = tpu.matmul %25, %32, %cst_19 {dimension_numbers = #tpu.dot_dimension_numbers<[1], [0], [0], [1], [0, 0, 1, 1], [], []>} : vector<32x128xf32>, vector<128x128xf32>, vector<32x128xf32> -> vector<32x128xf32>
    %c0_20 = arith.constant 0 : index
    %c0_21 = arith.constant 0 : index
    %34 = vector.load %arg8[%c0_20, %c0_21] : memref<1x128xf32, #tpu.memory_space<vmem>>, vector<1x128xf32>
    %35 = vector.broadcast %34 : vector<1x128xf32> to vector<32x128xf32>
    %36 = arith.addf %33, %35 : vector<32x128xf32>
    %c0_22 = arith.constant 0 : index
    %c0_23 = arith.constant 0 : index
    %37 = vector.load %arg9[%c0_22, %c0_23] : memref<128x128xf32, #tpu.memory_space<vmem>>, vector<128x128xf32>
    %cst_24 = arith.constant dense<0.000000e+00> : vector<32x128xf32>
    %38 = tpu.matmul %25, %37, %cst_24 {dimension_numbers = #tpu.dot_dimension_numbers<[1], [0], [0], [1], [0, 0, 1, 1], [], []>} : vector<32x128xf32>, vector<128x128xf32>, vector<32x128xf32> -> vector<32x128xf32>
    %c0_25 = arith.constant 0 : index
    %c0_26 = arith.constant 0 : index
    %39 = vector.load %arg10[%c0_25, %c0_26] : memref<1x128xf32, #tpu.memory_space<vmem>>, vector<1x128xf32>
    %40 = vector.broadcast %39 : vector<1x128xf32> to vector<32x128xf32>
    %41 = arith.addf %38, %40 : vector<32x128xf32>
    %c0_27 = arith.constant 0 : index
    %c0_28 = arith.constant 0 : index
    %42 = vector.load %arg11[%c0_27, %c0_28] : memref<128x128xf32, #tpu.memory_space<vmem>>, vector<128x128xf32>
    %cst_29 = arith.constant dense<0.000000e+00> : vector<32x128xf32>
    %43 = tpu.matmul %1, %42, %cst_29 {dimension_numbers = #tpu.dot_dimension_numbers<[1], [0], [0], [1], [0, 0, 1, 1], [], []>} : vector<32x128xf32>, vector<128x128xf32>, vector<32x128xf32> -> vector<32x128xf32>
    %c0_30 = arith.constant 0 : index
    %c0_31 = arith.constant 0 : index
    %44 = vector.load %arg12[%c0_30, %c0_31] : memref<1x128xf32, #tpu.memory_space<vmem>>, vector<1x128xf32>
    %45 = vector.broadcast %44 : vector<1x128xf32> to vector<32x128xf32>
    %46 = arith.addf %43, %45 : vector<32x128xf32>
    %cst_32 = arith.constant dense<0xFF800000> : vector<32xf32>
    %47 = vector.multi_reduction <maximumf>, %31, %cst_32 [1] : vector<32x128xf32> to vector<32xf32>
    %48 = vector.shape_cast %47 : vector<32xf32> to vector<32x1xf32>
    %49 = vector.broadcast %48 : vector<32x1xf32> to vector<32x128xf32>
    %50 = arith.subf %31, %49 : vector<32x128xf32>
    %51 = math.exp %50 : vector<32x128xf32>
    %cst_33 = arith.constant dense<0.000000e+00> : vector<32x128xf32>
    %52 = tpu.matmul %51, %26, %cst_33 {dimension_numbers = #tpu.dot_dimension_numbers<[1], [0], [0], [1], [0, 0, 1, 1], [], []>} : vector<32x128xf32>, vector<128x128xf32>, vector<32x128xf32> -> vector<32x128xf32>
    %53 = tpu.reciprocal %52 : vector<32x128xf32> -> vector<32x128xf32>
    %54 = arith.mulf %51, %53 : vector<32x128xf32>
    %55 = vector.shape_cast %54 : vector<32x128xf32> to vector<2x16x128xf32>
    %cst_34 = arith.constant dense<0xFF800000> : vector<32xf32>
    %56 = vector.multi_reduction <maximumf>, %36, %cst_34 [1] : vector<32x128xf32> to vector<32xf32>
    %57 = vector.shape_cast %56 : vector<32xf32> to vector<32x1xf32>
    %58 = vector.broadcast %57 : vector<32x1xf32> to vector<32x128xf32>
    %59 = arith.subf %36, %58 : vector<32x128xf32>
    %60 = math.exp %59 : vector<32x128xf32>
    %cst_35 = arith.constant dense<0.000000e+00> : vector<32x128xf32>
    %61 = tpu.matmul %60, %26, %cst_35 {dimension_numbers = #tpu.dot_dimension_numbers<[1], [0], [0], [1], [0, 0, 1, 1], [], []>} : vector<32x128xf32>, vector<128x128xf32>, vector<32x128xf32> -> vector<32x128xf32>
    %62 = tpu.reciprocal %61 : vector<32x128xf32> -> vector<32x128xf32>
    %63 = arith.mulf %60, %62 : vector<32x128xf32>
    %64 = vector.shape_cast %63 : vector<32x128xf32> to vector<2x16x128xf32>
    %65 = vector.shape_cast %41 : vector<32x128xf32> to vector<2x16x128xf32>
    %cst_36 = arith.constant dense<0.000000e+00> : vector<2x128x128xf32>
    %66 = tpu.matmul %64, %65, %cst_36 {dimension_numbers = #tpu.dot_dimension_numbers<[1], [1], [2], [2], [0, 0, 0, 2, 1, 2], [0], [0]>} : vector<2x16x128xf32>, vector<2x16x128xf32>, vector<2x128x128xf32> -> vector<2x128x128xf32>
    %67 = vector.shape_cast %26 : vector<128x128xf32> to vector<1x128x128xf32>
    %68 = vector.broadcast %67 : vector<1x128x128xf32> to vector<2x128x128xf32>
    %69 = arith.mulf %66, %68 : vector<2x128x128xf32>
    %cst_37 = arith.constant dense<0.000000e+00> : vector<2x16x128xf32>
    %70 = tpu.matmul %55, %69, %cst_37 {dimension_numbers = #tpu.dot_dimension_numbers<[2], [1], [1], [2], [0, 0, 0, 1, 1, 2], [0], [0]>} : vector<2x16x128xf32>, vector<2x128x128xf32>, vector<2x16x128xf32> -> vector<2x16x128xf32>
    %71 = vector.shape_cast %46 : vector<32x128xf32> to vector<2x16x128xf32>
    %72 = arith.addf %71, %70 : vector<2x16x128xf32>
    %c0_38 = arith.constant 0 : index
    %c0_39 = arith.constant 0 : index
    %c0_40 = arith.constant 0 : index
    %73 = vector.load %arg13[%c0_38, %c0_39, %c0_40] : memref<2x16x128xf32, #tpu.memory_space<vmem>>, vector<2x16x128xf32>
    tpu.vector_store %arg13[%c0_38, %c0_39, %c0_40], %72 {strides = array<i32>} : memref<2x16x128xf32, #tpu.memory_space<vmem>>, vector<2x16x128xf32>,
    return
  }
  func.func @transform_0(%arg0: i32) -> (i32, i32, i32) {
    %c0_i32 = arith.constant 0 : i32
    %c0_i32_0 = arith.constant 0 : i32
    %c0_i32_1 = arith.constant 0 : i32
    return %arg0, %c0_i32, %c0_i32_0 : i32, i32, i32
  }
  func.func @transform_1(%arg0: i32) -> (i32, i32) {
    %c0_i32 = arith.constant 0 : i32
    %c0_i32_0 = arith.constant 0 : i32
    %c0_i32_1 = arith.constant 0 : i32
    return %c0_i32, %c0_i32_0 : i32, i32
  }
  func.func @transform_2(%arg0: i32) -> (i32, i32) {
    %c0_i32 = arith.constant 0 : i32
    %c0_i32_0 = arith.constant 0 : i32
    %c0_i32_1 = arith.constant 0 : i32
    return %c0_i32, %c0_i32_0 : i32, i32
  }
  func.func @transform_3(%arg0: i32) -> (i32, i32) {
    %c0_i32 = arith.constant 0 : i32
    %c0_i32_0 = arith.constant 0 : i32
    %c0_i32_1 = arith.constant 0 : i32
    return %c0_i32, %c0_i32_0 : i32, i32
  }
  func.func @transform_4(%arg0: i32) -> (i32, i32) {
    %c0_i32 = arith.constant 0 : i32
    %c0_i32_0 = arith.constant 0 : i32
    %c0_i32_1 = arith.constant 0 : i32
    return %c0_i32, %c0_i32_0 : i32, i32
  }
  func.func @transform_5(%arg0: i32) -> (i32, i32) {
    %c0_i32 = arith.constant 0 : i32
    %c0_i32_0 = arith.constant 0 : i32
    %c0_i32_1 = arith.constant 0 : i32
    return %c0_i32, %c0_i32_0 : i32, i32
  }
  func.func @transform_6(%arg0: i32) -> (i32, i32) {
    %c0_i32 = arith.constant 0 : i32
    %c0_i32_0 = arith.constant 0 : i32
    %c0_i32_1 = arith.constant 0 : i32
    return %c0_i32, %c0_i32_0 : i32, i32
  }
  func.func @transform_7(%arg0: i32) -> (i32, i32) {
    %c0_i32 = arith.constant 0 : i32
    %c0_i32_0 = arith.constant 0 : i32
    %c0_i32_1 = arith.constant 0 : i32
    return %c0_i32, %c0_i32_0 : i32, i32
  }
  func.func @transform_8(%arg0: i32) -> (i32, i32) {
    %c0_i32 = arith.constant 0 : i32
    %c0_i32_0 = arith.constant 0 : i32
    %c0_i32_1 = arith.constant 0 : i32
    return %c0_i32, %c0_i32_0 : i32, i32
  }
  func.func @transform_9(%arg0: i32) -> (i32, i32) {
    %c0_i32 = arith.constant 0 : i32
    %c0_i32_0 = arith.constant 0 : i32
    %c0_i32_1 = arith.constant 0 : i32
    return %c0_i32, %c0_i32_0 : i32, i32
  }
  func.func @transform_10(%arg0: i32) -> (i32, i32) {
    %c0_i32 = arith.constant 0 : i32
    %c0_i32_0 = arith.constant 0 : i32
    %c0_i32_1 = arith.constant 0 : i32
    return %c0_i32, %c0_i32_0 : i32, i32
  }
  func.func @transform_11(%arg0: i32) -> (i32, i32) {
    %c0_i32 = arith.constant 0 : i32
    %c0_i32_0 = arith.constant 0 : i32
    %c0_i32_1 = arith.constant 0 : i32
    return %c0_i32, %c0_i32_0 : i32, i32
  }
  func.func @transform_12(%arg0: i32) -> (i32, i32, i32) {
    %c0_i32 = arith.constant 0 : i32
    %c0_i32_0 = arith.constant 0 : i32
    %c0_i32_1 = arith.constant 0 : i32
    return %arg0, %c0_i32, %c0_i32_0 : i32, i32, i32
  }
}

</mosaic_0001>

<bundles_post_ra>
// kernel: tpu_custom_call.1
= control target key start
LH: loop header
LB: loop body
LE: loop exit
PB: predicated region body
PF: predicated region fallthrough
CT: control target
= control target key end

     0   :  { %s3663_s0 = inlined_call_operand.hbm [shape: f32[4,16,128], index: 0, kind: input, shape index: {}]   ;;  %s3664_s1 = inlined_call_operand.hbm [shape: f32[128,128], index: 1, kind: input, shape index: {}]   ;;  %s3665_s2 = inlined_call_operand.vmem [shape: f32[1,128], index: 2, kind: input, shape index: {}]   ;;  %s3666_s3 = inlined_call_operand.vmem [shape: f32[1,128], index: 3, kind: input, shape index: {}]   ;;  %s3667_s4 = inlined_call_operand.hbm [shape: f32[128,128], index: 4, kind: input, shape index: {}]   ;;  %s3668_s5 = inlined_call_operand.vmem [shape: f32[1,128], index: 5, kind: input, shape index: {}]   ;;  %s3669_s6 = inlined_call_operand.hbm [shape: f32[128,128], index: 6, kind: input, shape index: {}]   ;;  %s3670_s7 = inlined_call_operand.vmem [shape: f32[1,128], index: 7, kind: input, shape index: {}]   ;;  %s3671_s8 = inlined_call_operand.hbm [shape: f32[128,128], index: 8, kind: input, shape index: {}]   ;;  %s3672_s9 = inlined_call_operand.vmem [shape: f32[1,128], index: 9, kind: input, shape index: {}]   ;;  %s3673_s10 = inlined_call_operand.hbm [shape: f32[128,128], index: 10, kind: input, shape index: {}]   ;;  %s3674_s11 = inlined_call_operand.vmem [shape: f32[1,128], index: 11, kind: input, shape index: {}]   ;;  %s3675_s12 = inlined_call_operand.hbm [shape: f32[4,16,128], index: 12, kind: output, shape index: {}]  }
   0x1   :  { %3682 = sst [smem:[#allocation20_spill]] %s3664_s1 }
   0x2   :  { %3683 = sst [smem:[#allocation21_spill]] %s3667_s4 }
   0x3   :  { %3684 = sst [smem:[#allocation22_spill]] %s3669_s6 }
   0x4   :  { %3685 = sst [smem:[#allocation23_spill]] %s3671_s8 }
   0x5   :  { %3686 = sst [smem:[#allocation24_spill]] %s3673_s10 }
   0x6   :  { %17 = vsyncpa [#allocation3], 0 }
   0x7   :  { %19 = vsyncpa [#allocation3 + $0x1], 0 }
   0x8   :  { %20 = vsyncpa [#allocation6], 0 }
   0x9   :  { %21 = vsyncpa [#allocation9], 0 }
   0xa   :  { %22 = vsyncpa [#allocation12], 0 }
   0xb   :  { %23 = vsyncpa [#allocation4], 0 }
   0xc   :  { %25 = vsyncpa [#allocation4 + $0x1], 0  ;;  %s3098_s21 = smov 0   ;;  %s3100_s22 = smov 0  }
   0xd   :  { %s3102_s23 = smov 0   ;;  %s3104_s24 = smov 0  }
   0xe LB: > { %s3022_s25 = smov [#allocation5]   ;;  %s3119_s27 = sadd.s32 4294967295, %s3020_s24   ;;  %s3020_s24 = sphi %s3104_s24, %s3717_s24   ;;  %s3016_s23 = sphi %s3102_s23, %s3716_s23   ;;  %s3012_s22 = sphi %s3100_s22, %s3715_s22   ;;  %s3008_s21 = sphi %s3098_s21, %s3714_s21  }
   0xf   : > { %s331_s26 = sshll.u32 %s3022_s25, 4  ;;  %p2031_p0 = scmp.ge.s32.totalorder %s3020_s24, 1  ;;  %s332_s26 = int_to_ptr.vmem [resolvable:$true] %s331_s26 }
  0x10   : > { %p3678_p1 = scmp.eq.s32.totalorder %s3119_s27, 0  ;;  %p319_p2 = scmp.lt.s32.totalorder %s3020_s24, 3 }
  0x11   : > { %s3023_s29 = smov [#allocation8]   ;;  %s3024_s14 = smov [#allocation7]  }
  0x12   : > { %p3124_p3 = pnand %p2031_p0, %p319_p2  ;;  %s366_s30 = sshll.u32 %s3023_s29, 4  ;;  %s3137_s30 = int_to_ptr.vmem [resolvable:$true] %s366_s30 }
  0x13   : > { %s350_s15 = sshll.u32 %s3024_s14, 4  ;;  %s2797_s17 = scalar_lea.vmem %s332_s26, 2048  ;;  %s3139_s15 = int_to_ptr.vmem [resolvable:$true] %s350_s15 }
  0x14   : > { %s3687_s28 = scalar_select %p3124_p3, 1, 0 }
  0x15   : > { %p2668_p5 = pneg %p3124_p3  ;;  %p2798_p8 = scmp.ne.s32.totalorder %s332_s26, %s2797_s17 }
  0x16   : > { %p2805_p11 = scmp.lt.s32.totalorder %s332_s26, %s332_s26  ;;  %p2806_p12 = scmp.lt.s32.totalorder %s2797_s17, %s2797_s17 }
  0x17   : > { %p3133_p6 = pnand %p2668_p5, %p3678_p1 }
  0x18   : > { %p2807_p13 = por %p2806_p12, %p2805_p11 }
  0x19   : > { %p3143_p7 = pneg %p3133_p6 }
  0x1b   : > { %p2800_p9 = pnand %p2798_p8, %p3143_p7 }
  0x1d   : > { %p2801_p10 = pneg %p2800_p9 }
  0x1f   : > { %p2808_p0 = pnand %p2807_p13, %p2801_p10 }
  0x21   : > { %2811 = shalt.err (!%p2808_p0)
}
  0x22   : > { %s3676_s18 = smov 128   ;;  %s3677_s19 = smov 8  }
  0x23   : > { %s3690_s1 = sld [smem:[#allocation20_spill]]  ;;  %s2823_s29 = scalar_lea.vmem %s3137_s30, 2048 }
  0x24   : > { %p2824_p2 = scmp.ne.s32.totalorder %s3137_s30, %s2823_s29  ;;  %p2831_p9 = scmp.lt.s32.totalorder %s3137_s30, %s3137_s30 }
  0x25   : > { %p2832_p10 = scmp.lt.s32.totalorder %s2823_s29, %s2823_s29 }
  0x26   : > { %p2826_p5 = pnand %p2824_p2, %p3143_p7 }
  0x27   : > { %p2833_p11 = por %p2832_p10, %p2831_p9 }
  0x28   : > { %p2827_p8 = pneg %p2826_p5 }
  0x29   : > { %2671 = dma.hbm_to_vmem [thread:$0]  (!%p3133_p6), %s3690_s1, 2048, %s332_s26, [#allocation6], %s3676_s18, %s3676_s18, %s3677_s19  }
  0x2a   : > { %p2834_p12 = pnand %p2833_p11, %p2827_p8 }
  0x2c   : > { %2837 = shalt.err (!%p2834_p12)
}
  0x2d   : > { %s3691_s6 = sld [smem:[#allocation22_spill]]  ;;  %s2849_s26 = scalar_lea.vmem %s3139_s15, 2048 }
  0x2e   : > { %p2850_p13 = scmp.ne.s32.totalorder %s3139_s15, %s2849_s26  ;;  %p2857_p5 = scmp.lt.s32.totalorder %s3139_s15, %s3139_s15 }
  0x2f   : > { %p2858_p8 = scmp.lt.s32.totalorder %s2849_s26, %s2849_s26 }
  0x30   : > { %p2852_p0 = pnand %p2850_p13, %p3143_p7 }
  0x31   : > { %p2859_p9 = por %p2858_p8, %p2857_p5 }
  0x32   : > { %p2853_p2 = pneg %p2852_p0 }
  0x33   : > { %2677 = dma.hbm_to_vmem [thread:$0]  (!%p3133_p6), %s3691_s6, 2048, %s3137_s30, [#allocation9], %s3676_s18, %s3676_s18, %s3677_s19  }
  0x34   : > { %p2860_p10 = pnand %p2859_p9, %p2853_p2 }
  0x36   : > { %2863 = shalt.err (!%p2860_p10)
}
  0x37   : > { %s3692_s4 = sld [smem:[#allocation21_spill]]  ;;  %s3027_s30 = smov [#allocation10]  }
  0x38   : > { %s382_s29 = sshll.u32 %s3027_s30, 4  ;;  %s3028_s14 = smov [#allocation11]   ;;  %s383_s29 = int_to_ptr.vmem [resolvable:$true] %s382_s29 }
  0x39   : > { %s398_s17 = sshll.u32 %s3028_s14, 4  ;;  %s2875_s26 = scalar_lea.vmem %s383_s29, 2048  ;;  %s399_s17 = int_to_ptr.vmem [resolvable:$true] %s398_s17 }
  0x3a   : > { %p2876_p11 = scmp.ne.s32.totalorder %s383_s29, %s2875_s26  ;;  %p2883_p0 = scmp.lt.s32.totalorder %s383_s29, %s383_s29 }
  0x3b   : > { %p2884_p2 = scmp.lt.s32.totalorder %s2875_s26, %s2875_s26 }
  0x3c   : > { %p2878_p12 = pnand %p2876_p11, %p3143_p7 }
  0x3d   : > { %2674 = dma.hbm_to_vmem [thread:$0]  (!%p3133_p6), %s3692_s4, 2048, %s3139_s15, [#allocation6], %s3676_s18, %s3676_s18, %s3677_s19  }
  0x3e   : > { %p2879_p13 = pneg %p2878_p12  ;;  %p2885_p5 = por %p2884_p2, %p2883_p0 }
  0x40   : > { %p2886_p8 = pnand %p2885_p5, %p2879_p13 }
  0x42   : > { %2889 = shalt.err (!%p2886_p8)
}
  0x43   : > { %s3693_s8 = sld [smem:[#allocation23_spill]]  ;;  %s2901_s25 = scalar_lea.vmem %s399_s17, 2048 }
  0x44   : > { %p2902_p9 = scmp.ne.s32.totalorder %s399_s17, %s2901_s25  ;;  %p2909_p12 = scmp.lt.s32.totalorder %s399_s17, %s399_s17 }
  0x45   : > { %p2910_p0 = scmp.lt.s32.totalorder %s2901_s25, %s2901_s25 }
  0x46   : > { %p2904_p10 = pnand %p2902_p9, %p3143_p7 }
  0x47   : > { %p2911_p13 = por %p2910_p0, %p2909_p12 }
  0x48   : > { %p2905_p11 = pneg %p2904_p10 }
  0x49   : > { %2680 = dma.hbm_to_vmem [thread:$0]  (!%p3133_p6), %s3693_s8, 2048, %s383_s29, [#allocation9], %s3676_s18, %s3676_s18, %s3677_s19  }
  0x4a   : > { %p2912_p2 = pnand %p2911_p13, %p2905_p11 }
  0x4c   : > { %2915 = shalt.err (!%p2912_p2)
}
  0x4d   : > { %s3694_s10 = sld [smem:[#allocation24_spill]]  ;;  %s2030_s13 = sadd.s32 4294967294, %s3020_s24  }
  0x4e   : > { %s3209_s16 = sadd.s32 1, %s3020_s24   ;;  %s38_s29 = sadd.s32 1, %s3016_s23 }
  0x4f   : > { %s35_s26 = ssub.s32 %s3020_s24, %s3209_s16  ;;  %p45_p7 = scmp.ne.s32.totalorder %s3016_s23, %s3012_s22 }
  0x50   : > { %p36_p5 = scmp.eq.s32.totalorder %s35_s26, 0  ;;  %p46_p8 = scmp.eq.s32.totalorder %s3020_s24, 0 }
  0x51   : > { %p51_p9 = scmp.ne.s32.totalorder %s3012_s22, %s3008_s21  ;;  %p306_p10 = scmp.eq.s32.totalorder %s3119_s27, 1 }
  0x52   : > { %s3221_s15 = scalar_select %p36_p5, %s3016_s23, %s38_s29  }
  0x53   : > { %2683 = dma.hbm_to_vmem [thread:$0]  (!%p3133_p6), %s3694_s10, 2048, %s399_s17, [#allocation12], %s3676_s18, %s3676_s18, %s3677_s19  }
  0x54   : > { %3695 = sst [smem:[#allocation19_spill]] %s3221_s15  ;;  %p47_p11 = por %p46_p8, %p45_p7 }
  0x55   : > { %p3225_p12 = por %p3678_p1, %p51_p9  ;;  %p3229_p6 = por %p306_p10, %p45_p7 }
  0x56   : > { %p312_p0 = scmp.eq.s32.totalorder %s2030_s13, 1  ;;  %p2697_p13 = scmp.lt.s32.totalorder %s3020_s24, 2 }
  0x57   : > { %s3696_s20 = scalar_select %p3225_p12, 1, 0 }
  0x58   : > { %s3697_s17 = scalar_select %p3229_p6, 1, 0 }
  0x59   : > { %s415_s25 = sand.u32 1, %s3016_s23   ;;  %p3235_p2 = por %p312_p0, %p51_p9 }
  0x5a   : > { %s2038_s14 = sshll.u32 %s415_s25, 5  ;;  %s2095_s29 = sshll.u32 %s3020_s24, 9 }
  0x5b   : > { %s3698_s30 = scalar_select %p3235_p2, 1, 0 }
  0x5c   : > { %s3243_s19 = scalar_lea.hbm %s3663_s0, %s2095_s29  ;;  %s419_s1 = scalar_lea.vmem [#allocation2], %s2038_s14 }
  0x5d   : > { %s427_s4 = sshll.u32 %s419_s1, 4  ;;  %p3245_p7 = pnand %p2697_p13, %p47_p11  ;;  %s3249_s4 = int_to_ptr.vmem [resolvable:$true] %s427_s4 }
  0x5e   : > { %s3251_s6 = scalar_lea.sflag [#allocation3], %s415_s25  ;;  %s2916_s8 = scalar_lea.hbm %s3243_s19, 512 }
  0x5f   : > { %p2917_p5 = scmp.ne.s32.totalorder %s3243_s19, %s2916_s8  ;;  %p2918_p8 = pneg %p3245_p7 }
  0x60   : > { %s2921_s14 = scalar_lea.hbm %s3663_s0, 1024  ;;  %p2922_p11 = scmp.lt.s32.totalorder %s3243_s19, %s3663_s0 }
  0x61   : > { %p2919_p9 = pnand %p2918_p8, %p2917_p5  ;;  %p2923_p0 = scmp.lt.s32.totalorder %s2921_s14, %s2916_s8 }
  0x63   : > { %p2920_p10 = pneg %p2919_p9  ;;  %p2924_p13 = por %p2923_p0, %p2922_p11 }
  0x65   : > { %p2925_p4 = pnand %p2924_p13, %p2920_p10 }
  0x67   : > { %2928 = shalt.err (!%p2925_p4)
}
  0x68   : > { %s2929_s25 = scalar_lea.vmem %s3249_s4, 512  ;;  %s3029_s10 = smov [#allocation2]  }
  0x69   : > { %p2930_p1 = scmp.ne.s32.totalorder %s3249_s4, %s2929_s25  ;;  %s2934_s15 = sshll.u32 %s3029_s10, 4  ;;  %s2935_s15 = int_to_ptr.vmem [resolvable:$false] %s2934_s15 }
  0x6a   : > { %s2936_s18 = scalar_lea.vmem %s2935_s15, 1024  ;;  %p2937_p9 = scmp.lt.s32.totalorder %s3249_s4, %s2935_s15 }
  0x6b   : > { %p2932_p2 = pnand %p2930_p1, %p2918_p8  ;;  %p2938_p6 = scmp.lt.s32.totalorder %s2936_s18, %s2929_s25 }
  0x6d   : > { %p2933_p5 = pneg %p2932_p2  ;;  %p2939_p12 = por %p2938_p6, %p2937_p9 }
  0x6f   : > { %p2940_p3 = pnand %p2939_p12, %p2933_p5 }
  0x71   : > { %2943 = shalt.err (!%p2940_p3)
}
  0x72   : > { %s3700_s8 = smov 8   ;;  %s3701_s29 = smov 128  }
  0x73   : > { %2687 = dma.hbm_to_vmem [thread:$0]  (!%p3245_p7), %s3243_s19, 512, %s3249_s4, %s3251_s6, %s3701_s29, %s3701_s29, %s3700_s8  }
  0x74   : > { %p3702_p1 = scmp.ne.s32.totalorder %s3687_s28, 0 }
  0x75   : > { %s3278_s10 = sand.u32 (!%p3702_p1), 1, %s3012_s22   ;;  %p3703_p3 = scmp.ne.s32.totalorder (!%p3702_p1), %s3696_s20, 0 }
  0x76   : > { %439 = sbr.rel (%p3702_p1) target bundleno = 1638 (0x666), region = 68  ;;  %s2043_s15 = sshll.u32 (!%p3702_p1), %s3278_s10, 5 }
  0x77   : > { %s442_s14 = scalar_lea.sflag (!%p3702_p1), [#allocation3], %s3278_s10  ;;  %s445_s13 = scalar_lea.vmem (!%p3702_p1), [#allocation2], %s2043_s15 }
  0x7b   : > { %2987 = dma.done.wait (%p3703_p3), %s442_s14, 512  }
  0x7c   : > { %2989 = vsyncadd (%p3703_p3), %s442_s14, 4294966784  ;;  %p3704_p4 = scmp.eq.s32.totalorder %s3119_s27, 0 }
  0x7e   : > { %2991 = dma.done.wait (%p3704_p4), [#allocation6], 4096   ;;  %p3705_p12 = pmov %p3704_p4 }
  0x7f   : > { %p3706_p6 = pmov %p3704_p4 }
  0x80   : > { %2993 = vsyncadd (%p3705_p12), [#allocation6], 4294963200 }
  0x81   : > { %2995 = dma.done.wait (%p3706_p6), [#allocation9], 4096   ;;  %p3707_p2 = pmov %p3704_p4 }
  0x83   : > { %2997 = vsyncadd (%p3707_p2), [#allocation9], 4294963200  ;;  %p3708_p7 = pmov %p3707_p2 }
  0x84   : > { %p3709_p8 = pmov %p3707_p2 }
  0x85   : > { %2999 = dma.done.wait (%p3708_p7), [#allocation12], 2048  }
  0x86   : > { %3001 = vsyncadd (%p3709_p8), [#allocation12], 4294965248  ;;  %v3300_v0 = vld [vmem:[%s445_s13] sm:$0xff]  ;;  %v3302_v1 = vld [vmem:[%s445_s13 + $0x10] sm:$0xff]  ;;  %vm1285_vm0 = vcmask 130048   ;;  %s2097_s6 = sshll.u32 %s3119_s27, 9 }
  0x87   : > { %512 = vadd.xlane.f32.xlu0 %v3300_v0  ;;  %516 = vadd.xlane.f32.xlu1 %v3302_v1  ;;  %v3306_v2 = vld [vmem:[%s445_s13 + $0x8] sm:$0xff]  ;;  %v3308_v3 = vld [vmem:[%s445_s13 + $0x18] sm:$0xff]  ;;  %v609_v6 = vld [vmem:[#allocation7 + $0x70] sm:$0xff]  ;;  %s505_s13 = scalar_lea.vmem [#allocation13], %s2043_s15  ;;  %s3620_s19 = scalar_lea.hbm %s3675_s12, %s2097_s6 }
  0x88   : > { %v610_v4 = vld [vmem:[#allocation7 + $0x78] sm:$0xff]  ;;  %v717_v7 = vld [vmem:[#allocation8 + $0x70] sm:$0xff]  ;;  %v608_v8 = vld [vmem:[#allocation7 + $0x68] sm:$0xff]  ;;  %s1909_s4 = sshll.u32 %s505_s13, 4  ;;  %s1895_s27 = scalar_lea.sflag [#allocation4], %s3278_s10  ;;  %s3615_s4 = int_to_ptr.vmem [resolvable:$true] %s1909_s4 }
  0x89   : > { %v718_v5 = vld [vmem:[#allocation8 + $0x78] sm:$0xff]  ;;  %2290 = vmatprep.subr.mxu0 %v610_v4  ;;  %v716_v25 = vld [vmem:[#allocation8 + $0x68] sm:$0xff]  ;;  %v607_v26 = vld [vmem:[#allocation7 + $0x60] sm:$0xff]  ;;  %s2944_s20 = scalar_lea.vmem %s3615_s4, 512  ;;  %p3710_p11 = scmp.ne.s32.totalorder %s3697_s17, 0 }
  0x8a   : > { %2328 = vmatprep.subr.mxu1 %v718_v5  ;;  %2291 = vmatpush3.msra.mxu0 %v610_v4  ;;  %v715_v27 = vld [vmem:[#allocation8 + $0x60] sm:$0xff]  ;;  %v606_v28 = vld [vmem:[#allocation7 + $0x58] sm:$0xff]  ;;  %v605_v30 = vld [vmem:[#allocation7 + $0x50] sm:$0xff]  ;;  %p2945_p10 = scmp.ne.s32.totalorder %s3615_s4, %s2944_s20  ;;  %s3030_s1 = smov [#allocation13]  }
  0x8b   : > { %514 = vadd.xlane.f32.xlu0 %v3306_v2  ;;  %518 = vadd.xlane.f32.xlu1 %v3308_v3  ;;  %v714_v29 = vld [vmem:[#allocation8 + $0x58] sm:$0xff]  ;;  %v713_v31 = vld [vmem:[#allocation8 + $0x50] sm:$0xff]  ;;  %v604_v32 = vld [vmem:[#allocation7 + $0x48] sm:$0xff]  ;;  %s2948_s26 = sshll.u32 %s3030_s1, 4  ;;  %s2949_s26 = int_to_ptr.vmem [resolvable:$false] %s2948_s26 }
  0x8c   : > { %2329 = vmatpush3.msra.mxu1 %v718_v5  ;;  %2292 = vmatprep.subr.mxu0 %v609_v6  ;;  %v712_v33 = vld [vmem:[#allocation8 + $0x48] sm:$0xff]  ;;  %v603_v34 = vld [vmem:[#allocation7 + $0x40] sm:$0xff]  ;;  %v602_v36 = vld [vmem:[#allocation7 + $0x38] sm:$0xff]  ;;  %p2946_p0 = pnand %p2945_p10, %p3710_p11  ;;  %s2950_s25 = scalar_lea.vmem %s2949_s26, 1024 }
  0x8d   : > { %2330 = vmatprep.subr.mxu1 %v717_v7  ;;  %2293 = vmatpush3.msra.mxu0 %v609_v6  ;;  %v711_v35 = vld [vmem:[#allocation8 + $0x40] sm:$0xff]  ;;  %v710_v37 = vld [vmem:[#allocation8 + $0x38] sm:$0xff]  ;;  %v601_v38 = vld [vmem:[#allocation7 + $0x30] sm:$0xff]  ;;  %p2951_p5 = scmp.lt.s32.totalorder %s3615_s4, %s2949_s26  ;;  %p2952_p9 = scmp.lt.s32.totalorder %s2950_s25, %s2944_s20 }
  0x8e   : > { %2331 = vmatpush3.msra.mxu1 %v717_v7  ;;  %2294 = vmatprep.subr.mxu0 %v608_v8  ;;  %v709_v39 = vld [vmem:[#allocation8 + $0x30] sm:$0xff]  ;;  %v600_v40 = vld [vmem:[#allocation7 + $0x28] sm:$0xff]  ;;  %v599_v42 = vld [vmem:[#allocation7 + $0x20] sm:$0xff]  ;;  %p2947_p13 = pneg %p2946_p0 }
  0x8f   : > { %2295 = vmatpush3.msra.mxu0 %v608_v8  ;;  %2332 = vmatprep.subr.mxu1 %v716_v25  ;;  %v708_v41 = vld [vmem:[#allocation8 + $0x28] sm:$0xff]  ;;  %v707_v43 = vld [vmem:[#allocation8 + $0x20] sm:$0xff]  ;;  %v598_v44 = vld [vmem:[#allocation7 + $0x18] sm:$0xff]  ;;  %p2953_p1 = por %p2952_p9, %p2951_p5 }
  0x90   : > { %2296 = vmatprep.subr.mxu0 %v607_v26  ;;  %2333 = vmatpush3.msra.mxu1 %v716_v25  ;;  %v706_v45 = vld [vmem:[#allocation8 + $0x18] sm:$0xff]  ;;  %v597_v46 = vld [vmem:[#allocation7 + $0x10] sm:$0xff]  ;;  %v596_v48 = vld [vmem:[#allocation7 + $0x8] sm:$0xff] }
  0x91   : > { %2297 = vmatpush3.msra.mxu0 %v607_v26  ;;  %2334 = vmatprep.subr.mxu1 %v715_v27  ;;  %v705_v47 = vld [vmem:[#allocation8 + $0x10] sm:$0xff]  ;;  %v704_v49 = vld [vmem:[#allocation8 + $0x8] sm:$0xff]  ;;  %v595_v50 = vld [vmem:[#allocation7] sm:$0xff]  ;;  %p2954_p3 = pnand %p2953_p1, %p2947_p13 }
  0x92   : > { %2298 = vmatprep.subr.mxu0 %v606_v28  ;;  %2335 = vmatpush3.msra.mxu1 %v715_v27  ;;  %v703_v51 = vld [vmem:[#allocation8] sm:$0xff]  ;;  %v826_v52 = vld [vmem:[#allocation10 + $0x78] sm:$0xff]  ;;  %v825_v25 = vld [vmem:[#allocation10 + $0x70] sm:$0xff] }
  0x93   : > { %2299 = vmatpush3.msra.mxu0 %v606_v28  ;;  %2336 = vmatprep.subr.mxu1 %v714_v29  ;;  %v934_v53 = vld [vmem:[#allocation11 + $0x78] sm:$0xff]  ;;  %v2050_v7 = vld [vmem:[%s3665_s2] ss:$0 sm:$0xff] }
  0x94   : > { %2300 = vmatprep.subr.mxu0 %v605_v30  ;;  %2337 = vmatpush3.msra.mxu1 %v714_v29  ;;  %v823_v27 = vld [vmem:[#allocation10 + $0x60] sm:$0xff]  ;;  %v822_v28 = vld [vmem:[#allocation10 + $0x58] sm:$0xff]  ;;  %v932_v29 = vld [vmem:[#allocation11 + $0x68] sm:$0xff] }
  0x95   : > { %2301 = vmatpush3.msra.mxu0 %v605_v30  ;;  %2338 = vmatprep.subr.mxu1 %v713_v31  ;;  %v821_v30 = vld [vmem:[#allocation10 + $0x50] sm:$0xff] }
  0x96   : > { %2302 = vmatprep.subr.mxu0 %v604_v32  ;;  %2339 = vmatpush3.msra.mxu1 %v713_v31  ;;  %v931_v31 = vld [vmem:[#allocation11 + $0x60] sm:$0xff] }
  0x97   : > { %2303 = vmatpush3.msra.mxu0 %v604_v32  ;;  %2340 = vmatprep.subr.mxu1 %v712_v33  ;;  %v820_v32 = vld [vmem:[#allocation10 + $0x48] sm:$0xff] }
  0x98   : > { %2304 = vmatprep.subr.mxu0 %v603_v34  ;;  %2341 = vmatpush3.msra.mxu1 %v712_v33  ;;  %v930_v33 = vld [vmem:[#allocation11 + $0x58] sm:$0xff] }
  0x99   : > { %2305 = vmatpush3.msra.mxu0 %v603_v34  ;;  %2342 = vmatprep.subr.mxu1 %v711_v35  ;;  %v819_v34 = vld [vmem:[#allocation10 + $0x40] sm:$0xff] }
  0x9a   : > { %2306 = vmatprep.subr.mxu0 %v602_v36  ;;  %2343 = vmatpush3.msra.mxu1 %v711_v35  ;;  %v929_v35 = vld [vmem:[#allocation11 + $0x50] sm:$0xff] }
  0x9b   : > { %2307 = vmatpush3.msra.mxu0 %v602_v36  ;;  %2344 = vmatprep.subr.mxu1 %v710_v37  ;;  %v818_v36 = vld [vmem:[#allocation10 + $0x38] sm:$0xff] }
  0x9c   : > { %2308 = vmatprep.subr.mxu0 %v601_v38  ;;  %2345 = vmatpush3.msra.mxu1 %v710_v37  ;;  %v928_v37 = vld [vmem:[#allocation11 + $0x48] sm:$0xff] }
  0x9d   : > { %2309 = vmatpush3.msra.mxu0 %v601_v38  ;;  %2346 = vmatprep.subr.mxu1 %v709_v39  ;;  %v817_v38 = vld [vmem:[#allocation10 + $0x30] sm:$0xff] }
  0x9e   : > { %2310 = vmatprep.subr.mxu0 %v600_v40  ;;  %2347 = vmatpush3.msra.mxu1 %v709_v39  ;;  %v927_v39 = vld [vmem:[#allocation11 + $0x40] sm:$0xff] }
  0x9f   : > { %2311 = vmatpush3.msra.mxu0 %v600_v40  ;;  %2348 = vmatprep.subr.mxu1 %v708_v41  ;;  %v816_v40 = vld [vmem:[#allocation10 + $0x28] sm:$0xff] }
  0xa0   : > { %2312 = vmatprep.subr.mxu0 %v599_v42  ;;  %2349 = vmatpush3.msra.mxu1 %v708_v41  ;;  %v926_v41 = vld [vmem:[#allocation11 + $0x38] sm:$0xff] }
  0xa1   : > { %2313 = vmatpush3.msra.mxu0 %v599_v42  ;;  %2350 = vmatprep.subr.mxu1 %v707_v43  ;;  %v815_v42 = vld [vmem:[#allocation10 + $0x20] sm:$0xff] }
  0xa2   : > { %2314 = vmatprep.subr.mxu0 %v598_v44  ;;  %2351 = vmatpush3.msra.mxu1 %v707_v43  ;;  %v925_v43 = vld [vmem:[#allocation11 + $0x30] sm:$0xff] }
  0xa3   : > { %2315 = vmatpush3.msra.mxu0 %v598_v44  ;;  %2352 = vmatprep.subr.mxu1 %v706_v45  ;;  %v814_v44 = vld [vmem:[#allocation10 + $0x18] sm:$0xff] }
  0xa4   : > { %2316 = vmatprep.subr.mxu0 %v597_v46  ;;  %2353 = vmatpush3.msra.mxu1 %v706_v45  ;;  %v924_v45 = vld [vmem:[#allocation11 + $0x28] sm:$0xff] }
  0xa5   : > { %2317 = vmatpush3.msra.mxu0 %v597_v46  ;;  %2354 = vmatprep.subr.mxu1 %v705_v47  ;;  %v813_v46 = vld [vmem:[#allocation10 + $0x10] sm:$0xff] }
  0xa6   : > { %2318 = vmatprep.subr.mxu0 %v596_v48  ;;  %2355 = vmatpush3.msra.mxu1 %v705_v47  ;;  %v923_v47 = vld [vmem:[#allocation11 + $0x20] sm:$0xff] }
  0xa7   : > { %2319 = vmatpush3.msra.mxu0 %v596_v48  ;;  %2356 = vmatprep.subr.mxu1 %v704_v49  ;;  %v812_v48 = vld [vmem:[#allocation10 + $0x8] sm:$0xff] }
  0xa8   : > { %2320 = vmatprep.subr.mxu0 %v595_v50  ;;  %2357 = vmatpush3.msra.mxu1 %v704_v49  ;;  %v922_v49 = vld [vmem:[#allocation11 + $0x18] sm:$0xff] }
  0xa9   : > { %2321 = vmatpush3.msra.mxu0 %v595_v50  ;;  %2358 = vmatprep.subr.mxu1 %v703_v51  ;;  %v811_v50 = vld [vmem:[#allocation10] sm:$0xff] }
  0xaa   : > { %2359 = vmatpush3.msra.mxu1 %v703_v51  ;;  %2366 = vmatprep.subr.mxu0 %v826_v52  ;;  %v921_v51 = vld [vmem:[#allocation11 + $0x10] sm:$0xff] }
  0xab   : > { %2404 = vmatprep.subr.mxu1 %v934_v53 }
 0x110   : > { %v513_v9 = vpop.xlane.xlu0 %512  ;;  %v517_v10 = vpop.xlane.xlu1 %516 }
 0x111   : > { %v521_v11 = vmul.f32 0.0078125, %v513_v9  ;;  %v523_v12 = vmul.f32 0.0078125, %v517_v10  ;;  %v2051_v9 = vld [vmem:[%s3666_s3] ss:$0 sm:$0xff] }
 0x113   : > { %v3313_v13 = vsub.f32 %v3300_v0, %v521_v11  ;;  %v3316_v14 = vsub.f32 %v3302_v1, %v523_v12 }
 0x114   : > { %v515_v15 = vpop.xlane.xlu0 %514  ;;  %v519_v16 = vpop.xlane.xlu1 %518 }
 0x115   : > { %v522_v17 = vmul.f32 0.0078125, %v515_v15  ;;  %v529_v18 = vmul.f32 %v3313_v13, %v3313_v13  ;;  %v524_v19 = vmul.f32 0.0078125, %v519_v16  ;;  %v531_v22 = vmul.f32 %v3316_v14, %v3316_v14 }
 0x117   : > { %v3321_v20 = vsub.f32 %v3306_v2, %v522_v17  ;;  %533 = vadd.xlane.f32.xlu0 %v529_v18  ;;  %v3324_v21 = vsub.f32 %v3308_v3, %v524_v19 }
 0x119   : > { %v530_v23 = vmul.f32 %v3321_v20, %v3321_v20  ;;  %v532_v24 = vmul.f32 %v3324_v21, %v3324_v21 }
 0x11b   : > { %537 = vadd.xlane.f32.xlu0 %v531_v22  ;;  %535 = vadd.xlane.f32.xlu1 %v530_v23 }
 0x11f   : > { %539 = vadd.xlane.f32.xlu1 %v532_v24 }
 0x1a0   : > { %v534_v54 = vpop.xlane.xlu0 %533 }
 0x1a1   : > { %v541_v55 = vmul.f32 0.0078125, %v534_v54  ;;  %v919_v54 = vld [vmem:[#allocation11] sm:$0xff] }
 0x1a3   : > { %v545_v56 = vadd.f32 1e-05, %v541_v55  ;;  %v3366_v55 = vld [vmem:[#allocation5 + $0x68] sm:$0xff] }
 0x1a4   : > { %v536_v57 = vpop.xlane.xlu1 %535  ;;  %v538_v58 = vpop.xlane.xlu0 %537 }
 0x1a5   : > { %2746 = vrsqrt.f32 %v545_v56  ;;  %v542_v59 = vmul.f32 0.0078125, %v536_v57  ;;  %v543_v60 = vmul.f32 0.0078125, %v538_v58  ;;  %v3372_v56 = vld [vmem:[#allocation5 + $0x60] sm:$0xff]  ;;  %v3378_v57 = vld [vmem:[#allocation5 + $0x58] sm:$0xff]  ;;  %v3390_v58 = vld [vmem:[#allocation5 + $0x48] sm:$0xff] }
 0x1a7   : > { %v546_v61 = vadd.f32 1e-05, %v542_v59  ;;  %v547_v62 = vadd.f32 1e-05, %v543_v60  ;;  %v3396_v59 = vld [vmem:[#allocation5 + $0x40] sm:$0xff]  ;;  %v3402_v60 = vld [vmem:[#allocation5 + $0x38] sm:$0xff] }
 0x1a8   : > { %v540_v63 = vpop.xlane.xlu1 %539 }
 0x1a9   : > { %2748 = vrsqrt.f32 %v546_v61  ;;  %v544_v4 = vmul.f32 0.0078125, %v540_v63  ;;  %v3404_v61 = vld [vmem:[#allocation5 + $0x30] sm:$0xff]  ;;  %v3416_v63 = vld [vmem:[#allocation5 + $0x20] sm:$0xff] }
 0x1aa   : > { %2750 = vrsqrt.f32 %v547_v62  ;;  %v3410_v62 = vld [vmem:[#allocation5 + $0x28] sm:$0xff] }
 0x1ab   : > { %v548_v5 = vadd.f32 1e-05, %v544_v4  ;;  %v3422_v4 = vld [vmem:[#allocation5 + $0x18] sm:$0xff] }
 0x1ad   : > { %2752 = vrsqrt.f32 %v548_v5  ;;  %v3428_v5 = vld [vmem:[#allocation5 + $0x10] sm:$0xff] }
 0x1b2   : > { %v2747_v6 = vpop.eup %2746 }
 0x1b3   : > { %v553_v8 = vmul.f32 %v2747_v6, %v3313_v13  ;;  %v3434_v6 = vld [vmem:[#allocation5 + $0x8] sm:$0xff] }
 0x1b5   : > { %v564_v10 = vmul.f32 %v2050_v7, %v553_v8  ;;  %v2053_v8 = vld [vmem:[%s3670_s7] ss:$0 sm:$0xff] }
 0x1b6   : > { %v2749_v11 = vpop.eup %2748 }
 0x1b7   : > { %v2751_v12 = vpop.eup %2750  ;;  %v575_v15 = vadd.f32 %v2051_v9, %v564_v10  ;;  %v554_v16 = vmul.f32 %v2749_v11, %v3321_v20 }
 0x1b8   : > { %v555_v17 = vmul.f32 %v2751_v12, %v3316_v14  ;;  %v824_v14 = vld [vmem:[#allocation10 + $0x68] sm:$0xff] }
 0x1b9   : > { %2322 = vmatprep.mubr.f32.mxu0 %v575_v15  ;;  %2360 = vmatprep.mubr.f32.mxu1 %v575_v15  ;;  %v565_v18 = vmul.f32 %v2050_v7, %v554_v16 }
 0x1ba   : > { %v2753_v19 = vpop.eup %2752  ;;  %v566_v22 = vmul.f32 %v2050_v7, %v555_v17  ;;  %v2052_v17 = vld [vmem:[%s3668_s5] ss:$0 sm:$0xff] }
 0x1bb   : > { %v3341_v23 = vadd.f32 %v2051_v9, %v565_v18  ;;  %v556_v13 = vmul.f32 %v2753_v19, %v3324_v21  ;;  %v933_v21 = vld [vmem:[#allocation11 + $0x70] sm:$0xff] }
 0x1bc   : > { %v3344_v24 = vadd.f32 %v2051_v9, %v566_v22 }
 0x1bd   : > { %2323 = vmatmul.mubr.f32.vlgmr.msra.gmra.mxu0 %v3341_v23  ;;  %2361 = vmatmul.mubr.f32.vlgmr.msra.gmra.mxu1 %v3341_v23  ;;  %v567_v26 = vmul.f32 %v2050_v7, %v556_v13  ;;  %v3444_v7 = vld [vmem:[#allocation5] sm:$0xff] }
 0x1be   : > { %2367 = vmatpush3.msra.mxu0 %v826_v52  ;;  %2325 = vmatprep.mubr.f32.mxu0 %v3344_v24  ;;  %v920_v52 = vld [vmem:[#allocation11 + $0x8] sm:$0xff] }
 0x1bf   : > { %2363 = vmatprep.mubr.f32.mxu1 %v3344_v24  ;;  %2368 = vmatprep.subr.mxu0 %v825_v25  ;;  %v3350_v20 = vadd.f32 %v2051_v9, %v567_v26 }
 0x1c0   : > { %2369 = vmatpush3.msra.mxu0 %v825_v25  ;;  %2405 = vmatpush3.msra.mxu1 %v934_v53  ;;  %v3358_v53 = vld [vmem:[#allocation5 + $0x78] sm:$0xff] }
 0x1c1   : > { %2370 = vmatprep.subr.mxu0 %v824_v14  ;;  %2326 = vmatmul.mubr.f32.gmra.mxu0 %v3350_v20 }
 0x1c2   : > { %2364 = vmatmul.mubr.f32.gmra.mxu1 %v3350_v20  ;;  %2371 = vmatpush3.msra.mxu0 %v824_v14  ;;  %v2054_v14 = vld [vmem:[%s3672_s9] ss:$0 sm:$0xff] }
 0x1c3   : > { %2372 = vmatprep.subr.mxu0 %v823_v27  ;;  %2398 = vmatprep.mubr.f32.mxu0 %v575_v15 }
 0x1c4   : > { %2373 = vmatpush3.msra.mxu0 %v823_v27  ;;  %2406 = vmatprep.subr.mxu1 %v933_v21 }
 0x1c5   : > { %2374 = vmatprep.subr.mxu0 %v822_v28  ;;  %2407 = vmatpush3.msra.mxu1 %v933_v21 }
 0x1c6   : > { %2375 = vmatpush3.msra.mxu0 %v822_v28  ;;  %2408 = vmatprep.subr.mxu1 %v932_v29 }
 0x1c7   : > { %2376 = vmatprep.subr.mxu0 %v821_v30  ;;  %2409 = vmatpush3.msra.mxu1 %v932_v29 }
 0x1c8   : > { %2377 = vmatpush3.msra.mxu0 %v821_v30  ;;  %2410 = vmatprep.subr.mxu1 %v931_v31 }
 0x1c9   : > { %2378 = vmatprep.subr.mxu0 %v820_v32  ;;  %2411 = vmatpush3.msra.mxu1 %v931_v31 }
 0x1ca   : > { %2379 = vmatpush3.msra.mxu0 %v820_v32  ;;  %2412 = vmatprep.subr.mxu1 %v930_v33 }
 0x1cb   : > { %2380 = vmatprep.subr.mxu0 %v819_v34  ;;  %2413 = vmatpush3.msra.mxu1 %v930_v33 }
 0x1cc   : > { %2381 = vmatpush3.msra.mxu0 %v819_v34  ;;  %2414 = vmatprep.subr.mxu1 %v929_v35 }
 0x1cd   : > { %2382 = vmatprep.subr.mxu0 %v818_v36  ;;  %2415 = vmatpush3.msra.mxu1 %v929_v35 }
 0x1ce   : > { %2383 = vmatpush3.msra.mxu0 %v818_v36  ;;  %2416 = vmatprep.subr.mxu1 %v928_v37 }
 0x1cf   : > { %2384 = vmatprep.subr.mxu0 %v817_v38  ;;  %2417 = vmatpush3.msra.mxu1 %v928_v37 }
 0x1d0   : > { %2385 = vmatpush3.msra.mxu0 %v817_v38  ;;  %2418 = vmatprep.subr.mxu1 %v927_v39 }
 0x1d1   : > { %2386 = vmatprep.subr.mxu0 %v816_v40  ;;  %2419 = vmatpush3.msra.mxu1 %v927_v39 }
 0x1d2   : > { %2387 = vmatpush3.msra.mxu0 %v816_v40  ;;  %2420 = vmatprep.subr.mxu1 %v926_v41 }
 0x1d3   : > { %2388 = vmatprep.subr.mxu0 %v815_v42  ;;  %2421 = vmatpush3.msra.mxu1 %v926_v41 }
 0x1d4   : > { %2389 = vmatpush3.msra.mxu0 %v815_v42  ;;  %2422 = vmatprep.subr.mxu1 %v925_v43 }
 0x1d5   : > { %2390 = vmatprep.subr.mxu0 %v814_v44  ;;  %2423 = vmatpush3.msra.mxu1 %v925_v43 }
 0x1d6   : > { %2391 = vmatpush3.msra.mxu0 %v814_v44  ;;  %2424 = vmatprep.subr.mxu1 %v924_v45 }
 0x1d7   : > { %2392 = vmatprep.subr.mxu0 %v813_v46  ;;  %2425 = vmatpush3.msra.mxu1 %v924_v45 }
 0x1d8   : > { %2393 = vmatpush3.msra.mxu0 %v813_v46  ;;  %2426 = vmatprep.subr.mxu1 %v923_v47 }
 0x1d9   : > { %2394 = vmatprep.subr.mxu0 %v812_v48  ;;  %2427 = vmatpush3.msra.mxu1 %v923_v47 }
 0x1da   : > { %2395 = vmatpush3.msra.mxu0 %v812_v48  ;;  %2428 = vmatprep.subr.mxu1 %v922_v49 }
 0x1db   : > { %2396 = vmatprep.subr.mxu0 %v811_v50  ;;  %2429 = vmatpush3.msra.mxu1 %v922_v49 }
 0x1dc   : > { %2397 = vmatpush3.msra.mxu0 %v811_v50  ;;  %2436 = vmatprep.mubr.f32.mxu1 %v3300_v0  ;;  %v3362_v0 = vld [vmem:[#allocation5 + $0x70] sm:$0xff] }
 0x1dd   : > { %2399 = vmatmul.mubr.f32.vlgmr.msra.gmra.mxu0 %v3341_v23  ;;  %2430 = vmatprep.subr.mxu1 %v921_v51 }
 0x1de   : > { %2401 = vmatprep.mubr.f32.mxu0 %v3344_v24  ;;  %2431 = vmatpush3.msra.mxu1 %v921_v51 }
 0x1df   : > { %2432 = vmatprep.subr.mxu1 %v920_v52  ;;  %2442 = vmatprep.subr.mxu0 %v3358_v53 }
 0x1e0   : > { %2433 = vmatpush3.msra.mxu1 %v920_v52  ;;  %2443 = vmatpush3.msra.mxu0 %v3358_v53 }
 0x1e1   : > { %2402 = vmatmul.mubr.f32.gmra.mxu0 %v3350_v20  ;;  %2434 = vmatprep.subr.mxu1 %v919_v54 }
 0x1e2   : > { %2444 = vmatprep.subr.mxu0 %v3362_v0  ;;  %2435 = vmatpush3.msra.mxu1 %v919_v54 }
 0x1e3   : > { %2445 = vmatpush3.msra.mxu0 %v3362_v0  ;;  %2480 = vmatprep.subr.mxu1 %v3358_v53 }
 0x1e4   : > { %2446 = vmatprep.subr.mxu0 %v3366_v55  ;;  %2437 = vmatmul.mubr.f32.vlgmr.msra.gmra.mxu1 %v3306_v2  ;;  %v3384_v2 = vld [vmem:[#allocation5 + $0x50] sm:$0xff] }
 0x1e5   : > { %2447 = vmatpush3.msra.mxu0 %v3366_v55  ;;  %2481 = vmatpush3.msra.mxu1 %v3358_v53 }
 0x1e6   : > { %2448 = vmatprep.subr.mxu0 %v3372_v56  ;;  %2482 = vmatprep.subr.mxu1 %v3362_v0 }
 0x1e7   : > { %2449 = vmatpush3.msra.mxu0 %v3372_v56  ;;  %2483 = vmatpush3.msra.mxu1 %v3362_v0 }
 0x1e8   : > { %2450 = vmatprep.subr.mxu0 %v3378_v57  ;;  %2484 = vmatprep.subr.mxu1 %v3366_v55 }
 0x1e9   : > { %2451 = vmatpush3.msra.mxu0 %v3378_v57  ;;  %2485 = vmatpush3.msra.mxu1 %v3366_v55 }
 0x1ea   : > { %2452 = vmatprep.subr.mxu0 %v3384_v2  ;;  %2486 = vmatprep.subr.mxu1 %v3372_v56 }
 0x1eb   : > { %2453 = vmatpush3.msra.mxu0 %v3384_v2  ;;  %2487 = vmatpush3.msra.mxu1 %v3372_v56 }
 0x1ec   : > { %2454 = vmatprep.subr.mxu0 %v3390_v58  ;;  %2488 = vmatprep.subr.mxu1 %v3378_v57 }
 0x1ed   : > { %2455 = vmatpush3.msra.mxu0 %v3390_v58  ;;  %2489 = vmatpush3.msra.mxu1 %v3378_v57 }
 0x1ee   : > { %2456 = vmatprep.subr.mxu0 %v3396_v59  ;;  %2490 = vmatprep.subr.mxu1 %v3384_v2 }
 0x1ef   : > { %2457 = vmatpush3.msra.mxu0 %v3396_v59  ;;  %2491 = vmatpush3.msra.mxu1 %v3384_v2 }
 0x1f0   : > { %2458 = vmatprep.subr.mxu0 %v3402_v60  ;;  %2492 = vmatprep.subr.mxu1 %v3390_v58 }
 0x1f1   : > { %2459 = vmatpush3.msra.mxu0 %v3402_v60  ;;  %2493 = vmatpush3.msra.mxu1 %v3390_v58 }
 0x1f2   : > { %2460 = vmatprep.subr.mxu0 %v3404_v61  ;;  %2494 = vmatprep.subr.mxu1 %v3396_v59 }
 0x1f3   : > { %2461 = vmatpush3.msra.mxu0 %v3404_v61  ;;  %2495 = vmatpush3.msra.mxu1 %v3396_v59 }
 0x1f4   : > { %2462 = vmatprep.subr.mxu0 %v3410_v62  ;;  %2496 = vmatprep.subr.mxu1 %v3402_v60 }
 0x1f5   : > { %2463 = vmatpush3.msra.mxu0 %v3410_v62  ;;  %2497 = vmatpush3.msra.mxu1 %v3402_v60 }
 0x1f6   : > { %2464 = vmatprep.subr.mxu0 %v3416_v63  ;;  %2498 = vmatprep.subr.mxu1 %v3404_v61 }
 0x1f7   : > { %2465 = vmatpush3.msra.mxu0 %v3416_v63  ;;  %2499 = vmatpush3.msra.mxu1 %v3404_v61 }
 0x1f8   : > { %2466 = vmatprep.subr.mxu0 %v3422_v4  ;;  %2500 = vmatprep.subr.mxu1 %v3410_v62 }
 0x1f9   : > { %2467 = vmatpush3.msra.mxu0 %v3422_v4  ;;  %2501 = vmatpush3.msra.mxu1 %v3410_v62 }
 0x1fa   : > { %2468 = vmatprep.subr.mxu0 %v3428_v5  ;;  %2502 = vmatprep.subr.mxu1 %v3416_v63 }
 0x1fb   : > { %2469 = vmatpush3.msra.mxu0 %v3428_v5  ;;  %2503 = vmatpush3.msra.mxu1 %v3416_v63 }
 0x1fc   : > { %2470 = vmatprep.subr.mxu0 %v3434_v6  ;;  %2504 = vmatprep.subr.mxu1 %v3422_v4 }
 0x1fd   : > { %2471 = vmatpush3.msra.mxu0 %v3434_v6  ;;  %2505 = vmatpush3.msra.mxu1 %v3422_v4 }
 0x1fe   : > { %2472 = vmatprep.subr.mxu0 %v3444_v7  ;;  %2506 = vmatprep.subr.mxu1 %v3428_v5 }
 0x1ff   : > { %2473 = vmatpush3.msra.mxu0 %v3444_v7  ;;  %2507 = vmatpush3.msra.mxu1 %v3428_v5 }
 0x200   : > { %2439 = vmatprep.mubr.f32.mxu1 %v3302_v1  ;;  %2508 = vmatprep.subr.mxu1 %v3434_v6 }
 0x201   : > { %2440 = vmatmul.mubr.f32.gmra.mxu1 %v3308_v3 }
 0x202   : > { %2509 = vmatpush3.msra.mxu1 %v3434_v6 }
 0x203   : > { %2510 = vmatprep.subr.mxu1 %v3444_v7 }
 0x204   : > { %2511 = vmatpush3.msra.mxu1 %v3444_v7 }
 0x27d   : > { %v2362_v9 = vpop.f32.mrf.mxu1  ;;  %v2324_v10 = vpop.f32.mrf.mxu0 }
 0x27e   : > { %v798_v11 = vadd.f32 %v2362_v9, %v2053_v8  ;;  %v690_v23 = vadd.f32 %v2324_v10, %v2052_v17 }
 0x27f   : > { %v792_v12 = vpop.f32.mrf.mxu1  ;;  %v684_v1 = vpop.f32.mrf.mxu0 }
 0x280   : > { %v793_v15 = vadd.f32 %v2053_v8, %v792_v12  ;;  %1142 = vmax.xlane.f32.xlu1 %v798_v11  ;;  %v685_v13 = vadd.f32 %v2052_v17, %v684_v1 }
 0x281   : > { %v2327_v22 = vpop.f32.mrf.mxu0 }
 0x282   : > { %v2365_v16 = vpop.f32.mrf.mxu1  ;;  %1140 = vmax.xlane.f32.xlu0 %v793_v15  ;;  %v700_v25 = vadd.f32 %v2327_v22, %v2052_v17 }
 0x283   : > { %v808_v3 = vadd.f32 %v2365_v16, %v2053_v8  ;;  %v694_v24 = vpop.f32.mrf.mxu0 }
 0x284   : > { %v802_v18 = vpop.f32.mrf.mxu1  ;;  %v695_v26 = vadd.f32 %v2052_v17, %v694_v24 }
 0x285   : > { %v803_v19 = vadd.f32 %v2053_v8, %v802_v18  ;;  %1146 = vmax.xlane.f32.xlu1 %v808_v3 }
 0x287   : > { %1144 = vmax.xlane.f32.xlu0 %v803_v19 }
 0x289   : > { %1029 = vmax.xlane.f32.xlu1 %v690_v23 }
 0x28b   : > { %1027 = vmax.xlane.f32.xlu0 %v685_v13 }
 0x28d   : > { %1033 = vmax.xlane.f32.xlu1 %v700_v25 }
 0x28f   : > { %1031 = vmax.xlane.f32.xlu0 %v695_v26 }
 0x29d   : > { %v2400_v20 = vpop.f32.mrf.mxu0 }
 0x29e   : > { %v906_v27 = vadd.f32 %v2400_v20, %v2054_v14 }
 0x29f   : > { %v900_v21 = vpop.f32.mrf.mxu0 }
 0x2a0   : > { %v901_v28 = vadd.f32 %v2054_v14, %v900_v21  ;;  %2518 = vmatprep.subr.mxu0 %v906_v27 }
 0x2a1   : > { %v2403_v29 = vpop.f32.mrf.mxu0 }
 0x2a2   : > { %v916_v30 = vadd.f32 %v2403_v29, %v2054_v14 }
 0x2a3   : > { %v910_v9 = vpop.f32.mrf.mxu0 }
 0x2a4   : > { %2546 = vmatprep.subr.mxu1 %v916_v30  ;;  %v911_v12 = vadd.f32 %v2054_v14, %v910_v9 }
 0x309   : > { %v1143_v31 = vpop.xlane.xlu1 %1142 }
 0x30a   : > { %v1149_v32 = vsub.f32 %v798_v11, %v1143_v31 }
 0x30b   : > { %v1141_v33 = vpop.xlane.xlu0 %1140 }
 0x30c   : > { %v1148_v34 = vsub.f32 %v793_v15, %v1141_v33  ;;  %v1154_v35 = vmul.f32 1.442695, %v1149_v32 }
 0x30e   : > { %v1152_v36 = vmul.f32 1.442695, %v1148_v34  ;;  %v1147_v37 = vpop.xlane.xlu1 %1146 }
 0x30f   : > { %v1151_v38 = vsub.f32 %v808_v3, %v1147_v37 }
 0x310   : > { %2754 = vpow2.f32 %v1152_v36  ;;  %v1145_v39 = vpop.xlane.xlu0 %1144 }
 0x311   : > { %2756 = vpow2.f32 %v1154_v35  ;;  %v1150_v40 = vsub.f32 %v803_v19, %v1145_v39  ;;  %v1158_v41 = vmul.f32 1.442695, %v1151_v38  ;;  %v3478_v19 = vpop.f32.mrf.mxu1 }
 0x312   : > { %v1030_v42 = vpop.xlane.xlu1 %1029 }
 0x313   : > { %v1156_v43 = vmul.f32 1.442695, %v1150_v40  ;;  %v1036_v44 = vsub.f32 %v690_v23, %v1030_v42  ;;  %v3480_v22 = vpop.f32.mrf.mxu1 }
 0x314   : > { %v1028_v45 = vpop.xlane.xlu0 %1027 }
 0x315   : > { %2758 = vpow2.f32 %v1156_v43  ;;  %v1035_v46 = vsub.f32 %v685_v13, %v1028_v45  ;;  %v1041_v47 = vmul.f32 1.442695, %v1036_v44  ;;  %v3482_v23 = vpop.f32.mrf.mxu1 }
 0x316   : > { %2760 = vpow2.f32 %v1158_v41  ;;  %v1034_v48 = vpop.xlane.xlu1 %1033 }
 0x317   : > { %v1039_v49 = vmul.f32 1.442695, %v1035_v46  ;;  %v1038_v50 = vsub.f32 %v700_v25, %v1034_v48  ;;  %v3484_v13 = vpop.f32.mrf.mxu1 }
 0x318   : > { %v1032_v51 = vpop.xlane.xlu0 %1031 }
 0x319   : > { %2762 = vpow2.f32 %v1039_v49  ;;  %v1037_v52 = vsub.f32 %v695_v26, %v1032_v51  ;;  %v1045_v54 = vmul.f32 1.442695, %v1038_v50 }
 0x31a   : > { %2764 = vpow2.f32 %v1041_v47 }
 0x31b   : > { %v1043_v8 = vmul.f32 1.442695, %v1037_v52 }
 0x31d   : > { %v2755_v10 = vpop.eup %2754  ;;  %2766 = vpow2.f32 %v1043_v8 }
 0x31e   : > { %v2757_v11 = vpop.eup %2756  ;;  %2768 = vpow2.f32 %v1045_v54  ;;  %2512 = vmatprep.mubr.f32.mxu1 %v2755_v10 }
 0x31f   : > { %2513 = vmatmul.mubr.f32.vlgmr.msra.gmra.mxu1 %v2757_v11 }
 0x320   : > { %2547 = vmatpush3.msra.mxu1 %v916_v30 }
 0x321   : > { %2548 = vmatprep.subr.mxu1 %v911_v12 }
 0x322   : > { %v2759_v15 = vpop.eup %2758  ;;  %2549 = vmatpush3.msra.mxu1 %v911_v12 }
 0x323   : > { %v2761_v1 = vpop.eup %2760  ;;  %2515 = vmatprep.mubr.f32.mxu1 %v2759_v15 }
 0x324   : > { %2516 = vmatmul.mubr.f32.gmra.mxu1 %v2761_v1 }
 0x326   : > { %v3466_v16 = vpop.eup %2762 }
 0x327   : > { %v3468_v3 = vpop.eup %2764  ;;  %2474 = vmatprep.mubr.f32.mxu0 %v3466_v16 }
 0x328   : > { %2475 = vmatmul.mubr.f32.vlgmr.msra.gmra.mxu0 %v3468_v3 }
 0x329   : > { %2519 = vmatpush3.msra.mxu0 %v906_v27 }
 0x32a   : > { %v3472_v17 = vpop.eup %2766  ;;  %2520 = vmatprep.subr.mxu0 %v901_v28 }
 0x32b   : > { %v3474_v18 = vpop.eup %2768  ;;  %2521 = vmatpush3.msra.mxu0 %v901_v28  ;;  %2477 = vmatprep.mubr.f32.mxu0 %v3472_v17 }
 0x32c   : > { %2478 = vmatmul.mubr.f32.gmra.mxu0 %v3474_v18 }
 0x3df   : > { %v2514_v24 = vpop.f32.mrf.mxu1 }
 0x3e1   : > { %v1226_v25 = vpop.f32.mrf.mxu1 }
 0x3e2   : > { %2770 = vrcp.f32 %v1226_v25 }
 0x3e3   : > { %2772 = vrcp.f32 %v2514_v24 }
 0x3e4   : > { %v2517_v26 = vpop.f32.mrf.mxu1 }
 0x3e6   : > { %v1236_v14 = vpop.f32.mrf.mxu1 }
 0x3e7   : > { %2774 = vrcp.f32 %v1236_v14 }
 0x3e8   : > { %2776 = vrcp.f32 %v2517_v26  ;;  %v3502_v50 = vpop.f32.mrf.mxu0 }
 0x3ea   : > { %v1113_v54 = vpop.f32.mrf.mxu0 }
 0x3eb   : > { %2778 = vrcp.f32 %v1113_v54 }
 0x3ef   : > { %v2771_v20 = vpop.eup %2770 }
 0x3f0   : > { %v1249_v27 = vmul.f32 %v2771_v20, %v2755_v10  ;;  %v2773_v21 = vpop.eup %2772  ;;  %v3508_v10 = vpop.f32.mrf.mxu0 }
 0x3f1   : > { %v1250_v29 = vmul.f32 %v2773_v21, %v2757_v11 }
 0x3f2   : > { %1253 = vxpose.xlu0.b32.start [1/2] (short) %v1249_v27, 128 }
 0x3f4   : > { %v2775_v28 = vpop.eup %2774 }
 0x3f5   : > { %v1251_v30 = vmul.f32 %v2775_v28, %v2759_v15  ;;  %v2777_v31 = vpop.eup %2776  ;;  %v1123_v15 = vpop.f32.mrf.mxu0 }
 0x3f6   : > { %1254 = vxpose.xlu0.b32.end [2/2] (short) %v1250_v29, 128  ;;  %v1252_v32 = vmul.f32 %v2777_v31, %v2761_v1  ;;  %2780 = vrcp.f32 %v1123_v15 }
 0x3f7   : > { %1479 = vxpose.xlu1.b32.start [1/2] (short) %v1251_v30, 128  ;;  %2782 = vrcp.f32 %v3502_v50 }
 0x3f8   : > { %v2779_v20 = vpop.eup %2778  ;;  %2784 = vrcp.f32 %v3508_v10 }
 0x3f9   : > { %v1136_v28 = vmul.f32 %v2779_v20, %v3466_v16 }
 0x3fb   : > { %1480 = vxpose.xlu1.b32.end [2/2] (short) %v1252_v32, 128 }
 0x403   : > { %v2781_v30 = vpop.eup %2780 }
 0x404   : > { %v1138_v32 = vmul.f32 %v2781_v30, %v3472_v17 }
 0x46e   : > { %v1269_v33 = vpop.trf.xlu0 }
 0x46f   : > { %2522 = vmatprep.mubr.msk.f32.mxu0 %vm1285_vm0, %v1269_v33 }
 0x472   : > { %v1270_v34 = vpop.trf.xlu0 }
 0x473   : > { %v1495_v35 = vpop.trf.xlu1  ;;  %2523 = vmatmul.mubr.msk.f32.vlgmr.msra.gmra.mxu0 %vm1285_vm0, %v1270_v34 }
 0x474   : > { %2550 = vmatprep.mubr.msk.f32.mxu1 %vm1285_vm0, %v1495_v35 }
 0x476   : > { %v1271_v36 = vpop.trf.xlu0 }
 0x477   : > { %v1496_v37 = vpop.trf.xlu1  ;;  %2525 = vmatprep.mubr.msk.f32.mxu0 %vm1285_vm0, %v1271_v36 }
 0x478   : > { %2551 = vmatmul.mubr.msk.f32.vlgmr.msra.gmra.mxu1 %vm1285_vm0, %v1496_v37 }
 0x47a   : > { %v1272_v38 = vpop.trf.xlu0 }
 0x47b   : > { %v1497_v39 = vpop.trf.xlu1  ;;  %2526 = vmatmul.mubr.msk.f32.gmra.mxu0 %vm1285_vm0, %v1272_v38 }
 0x47c   : > { %2553 = vmatprep.mubr.msk.f32.mxu1 %vm1285_vm0, %v1497_v39 }
 0x47e   : > { %v1273_v40 = vpop.trf.xlu0 }
 0x47f   : > { %v1498_v41 = vpop.trf.xlu1  ;;  %2528 = vmatprep.mubr.msk.f32.mxu0 %vm1285_vm0, %v1273_v40 }
 0x480   : > { %2554 = vmatmul.mubr.msk.f32.gmra.mxu1 %vm1285_vm0, %v1498_v41 }
 0x482   : > { %v1274_v42 = vpop.trf.xlu0 }
 0x483   : > { %v1499_v43 = vpop.trf.xlu1  ;;  %2529 = vmatmul.mubr.msk.f32.gmra.mxu0 %vm1285_vm0, %v1274_v42 }
 0x484   : > { %2556 = vmatprep.mubr.msk.f32.mxu1 %vm1285_vm0, %v1499_v43 }
 0x486   : > { %v1275_v44 = vpop.trf.xlu0 }
 0x487   : > { %v1500_v45 = vpop.trf.xlu1  ;;  %2531 = vmatprep.mubr.msk.f32.mxu0 %vm1285_vm0, %v1275_v44 }
 0x488   : > { %2557 = vmatmul.mubr.msk.f32.gmra.mxu1 %vm1285_vm0, %v1500_v45 }
 0x48a   : > { %v1276_v46 = vpop.trf.xlu0 }
 0x48b   : > { %v1501_v47 = vpop.trf.xlu1  ;;  %2532 = vmatmul.mubr.msk.f32.gmra.mxu0 %vm1285_vm0, %v1276_v46 }
 0x48c   : > { %2559 = vmatprep.mubr.msk.f32.mxu1 %vm1285_vm0, %v1501_v47 }
 0x48e   : > { %v1277_v48 = vpop.trf.xlu0 }
 0x48f   : > { %v1502_v49 = vpop.trf.xlu1  ;;  %2534 = vmatprep.mubr.msk.f32.mxu0 %vm1285_vm0, %v1277_v48 }
 0x490   : > { %2560 = vmatmul.mubr.msk.f32.gmra.mxu1 %vm1285_vm0, %v1502_v49 }
 0x492   : > { %v1278_v51 = vpop.trf.xlu0 }
 0x493   : > { %v1503_v52 = vpop.trf.xlu1  ;;  %2535 = vmatmul.mubr.msk.f32.gmra.mxu0 %vm1285_vm0, %v1278_v51 }
 0x494   : > { %2562 = vmatprep.mubr.msk.f32.mxu1 %vm1285_vm0, %v1503_v52 }
 0x496   : > { %v1279_v8 = vpop.trf.xlu0 }
 0x497   : > { %v1504_v9 = vpop.trf.xlu1  ;;  %2537 = vmatprep.mubr.msk.f32.mxu0 %vm1285_vm0, %v1279_v8 }
 0x498   : > { %2563 = vmatmul.mubr.msk.f32.gmra.mxu1 %vm1285_vm0, %v1504_v9 }
 0x49a   : > { %v1280_v11 = vpop.trf.xlu0 }
 0x49b   : > { %v1505_v12 = vpop.trf.xlu1  ;;  %2538 = vmatmul.mubr.msk.f32.gmra.mxu0 %vm1285_vm0, %v1280_v11 }
 0x49c   : > { %2565 = vmatprep.mubr.msk.f32.mxu1 %vm1285_vm0, %v1505_v12 }
 0x49e   : > { %v1281_v1 = vpop.trf.xlu0 }
 0x49f   : > { %v1506_v24 = vpop.trf.xlu1  ;;  %2540 = vmatprep.mubr.msk.f32.mxu0 %vm1285_vm0, %v1281_v1 }
 0x4a0   : > { %2566 = vmatmul.mubr.msk.f32.gmra.mxu1 %vm1285_vm0, %v1506_v24 }
 0x4a2   : > { %v1282_v25 = vpop.trf.xlu0 }
 0x4a3   : > { %v1507_v26 = vpop.trf.xlu1  ;;  %2541 = vmatmul.mubr.msk.f32.gmra.mxu0 %vm1285_vm0, %v1282_v25 }
 0x4a4   : > { %2568 = vmatprep.mubr.msk.f32.mxu1 %vm1285_vm0, %v1507_v26 }
 0x4a6   : > { %v1283_v14 = vpop.trf.xlu0 }
 0x4a7   : > { %v1508_v27 = vpop.trf.xlu1  ;;  %2543 = vmatprep.mubr.msk.f32.mxu0 %vm1285_vm0, %v1283_v14 }
 0x4a8   : > { %2569 = vmatmul.mubr.msk.f32.gmra.mxu1 %vm1285_vm0, %v1508_v27 }
 0x4aa   : > { %v1284_v21 = vpop.trf.xlu0 }
 0x4ab   : > { %v1509_v29 = vpop.trf.xlu1  ;;  %2544 = vmatmul.mubr.msk.f32.gmra.mxu0 %vm1285_vm0, %v1284_v21 }
 0x4ac   : > { %2571 = vmatprep.mubr.msk.f32.mxu1 %vm1285_vm0, %v1509_v29  ;;  %2606 = vmatprep.mubr.f32.mxu0 %v1136_v28 }
 0x4af   : > { %v1510_v31 = vpop.trf.xlu1 }
 0x4b0   : > { %2572 = vmatmul.mubr.msk.f32.gmra.mxu1 %vm1285_vm0, %v1510_v31 }
 0x4b1   : > { %2641 = vmatprep.mubr.f32.mxu1 %v1138_v32 }
 0x533   : > { %v3524_v33 = vpop.f32.mrf.mxu0 }
 0x535   : > { %v3526_v34 = vpop.f32.mrf.mxu0 }
 0x538   : > { %v3528_v35 = vpop.f32.mrf.mxu1 }
 0x53a   : > { %v3532_v36 = vpop.f32.mrf.mxu1 }
 0x53b   : > { %v3530_v16 = vpop.f32.mrf.mxu0 }
 0x53d   : > { %v3534_v37 = vpop.f32.mrf.mxu0 }
 0x53e   : > { %v1706_v10 = vmul.f32 %v3534_v37, %v3428_v5  ;;  %v1704_v37 = vmul.f32 %v3526_v34, %v3444_v7  ;;  %v1720_v34 = vmul.f32 %v3532_v36, %v3444_v7 }
 0x540   : > { %v3536_v38 = vpop.f32.mrf.mxu1 }
 0x542   : > { %v3540_v17 = vpop.f32.mrf.mxu1 }
 0x543   : > { %v3538_v39 = vpop.f32.mrf.mxu0 }
 0x545   : > { %v3542_v40 = vpop.f32.mrf.mxu0 }
 0x546   : > { %v1708_v50 = vmul.f32 %v3542_v40, %v3416_v63  ;;  %v2783_v40 = vpop.eup %2782 }
 0x548   : > { %v3544_v41 = vpop.f32.mrf.mxu1 }
 0x54a   : > { %v3546_v43 = vpop.f32.mrf.mxu1 }
 0x54b   : > { %v2533_v42 = vpop.f32.mrf.mxu0 }
 0x54d   : > { %v3548_v44 = vpop.f32.mrf.mxu0 }
 0x550   : > { %v3550_v45 = vpop.f32.mrf.mxu1 }
 0x552   : > { %v3552_v47 = vpop.f32.mrf.mxu1 }
 0x553   : > { %v2536_v46 = vpop.f32.mrf.mxu0 }
 0x555   : > { %v1440_v48 = vpop.f32.mrf.mxu0 }
 0x558   : > { %v2564_v49 = vpop.f32.mrf.mxu1 }
 0x55a   : > { %v1665_v52 = vpop.f32.mrf.mxu1 }
 0x55b   : > { %v2539_v51 = vpop.f32.mrf.mxu0 }
 0x55c   : > { %v1715_v31 = vmul.f32 %v2539_v51, %v3378_v57 }
 0x55d   : > { %v1450_v54 = vpop.f32.mrf.mxu0 }
 0x560   : > { %v2567_v8 = vpop.f32.mrf.mxu1 }
 0x561   : > { %v1731_v51 = vmul.f32 %v2567_v8, %v3378_v57  ;;  %v1710_v57 = vmul.f32 %v3548_v44, %v3404_v61 }
 0x562   : > { %v1675_v11 = vpop.f32.mrf.mxu1 }
 0x563   : > { %v2542_v9 = vpop.f32.mrf.mxu0 }
 0x564   : > { %v1717_v20 = vmul.f32 %v2542_v9, %v3366_v55  ;;  %v1714_v9 = vmul.f32 %v1450_v54, %v3384_v2  ;;  %v1730_v54 = vmul.f32 %v1675_v11, %v3384_v2  ;;  %v1709_v2 = vmul.f32 %v3538_v39, %v3410_v62 }
 0x565   : > { %v1460_v12 = vpop.f32.mrf.mxu0  ;;  %v1707_v39 = vmul.f32 %v3530_v16, %v3422_v4  ;;  %v1705_v16 = vmul.f32 %v3524_v33, %v3434_v6  ;;  %v1137_v33 = vmul.f32 %v2783_v40, %v3468_v3 }
 0x566   : > { %v1716_v28 = vmul.f32 %v1460_v12, %v3372_v56 }
 0x568   : > { %v2570_v15 = vpop.f32.mrf.mxu1 }
 0x569   : > { %v1733_v32 = vmul.f32 %v2570_v15, %v3366_v55  ;;  %v1712_v55 = vmul.f32 %v1440_v48, %v3396_v59  ;;  %v1728_v48 = vmul.f32 %v1665_v52, %v3396_v59  ;;  %v1726_v59 = vmul.f32 %v3552_v47, %v3404_v61 }
 0x56a   : > { %v1685_v26 = vpop.f32.mrf.mxu1  ;;  %v1724_v61 = vmul.f32 %v3546_v43, %v3416_v63  ;;  %v1722_v63 = vmul.f32 %v3540_v17, %v3428_v5 }
 0x56b   : > { %v2545_v1 = vpop.f32.mrf.mxu0 }
 0x56c   : > { %v1719_v24 = vmul.f32 %v2545_v1, %v3358_v53 }
 0x56d   : > { %v1470_v25 = vpop.f32.mrf.mxu0 }
 0x56e   : > { %v1718_v14 = vmul.f32 %v1470_v25, %v3362_v0  ;;  %2574 = vmatprep.subr.mxu0 %v1719_v24 }
 0x56f   : > { %2575 = vmatpush3.msra.mxu0 %v1719_v24 }
 0x570   : > { %v2573_v27 = vpop.f32.mrf.mxu1  ;;  %2576 = vmatprep.subr.mxu0 %v1718_v14 }
 0x571   : > { %v1735_v21 = vmul.f32 %v2573_v27, %v3358_v53  ;;  %2577 = vmatpush3.msra.mxu0 %v1718_v14  ;;  %v1732_v53 = vmul.f32 %v1685_v26, %v3372_v56  ;;  %v1711_v56 = vmul.f32 %v2533_v42, %v3402_v60 }
 0x572   : > { %v1695_v29 = vpop.f32.mrf.mxu1  ;;  %2578 = vmatprep.subr.mxu0 %v1717_v20 }
 0x573   : > { %v1734_v30 = vmul.f32 %v1695_v29, %v3362_v0  ;;  %2609 = vmatprep.subr.mxu1 %v1735_v21  ;;  %2579 = vmatpush3.msra.mxu0 %v1717_v20  ;;  %v1713_v0 = vmul.f32 %v2536_v46, %v3390_v58  ;;  %v1729_v46 = vmul.f32 %v2564_v49, %v3390_v58 }
 0x574   : > { %2610 = vmatpush3.msra.mxu1 %v1735_v21  ;;  %2580 = vmatprep.subr.mxu0 %v1716_v28  ;;  %v1727_v58 = vmul.f32 %v3550_v45, %v3402_v60  ;;  %v1725_v60 = vmul.f32 %v3544_v41, %v3410_v62  ;;  %v1723_v62 = vmul.f32 %v3536_v38, %v3422_v4  ;;  %v2785_v4 = vpop.eup %2784 }
 0x575   : > { %2611 = vmatprep.subr.mxu1 %v1734_v30  ;;  %2581 = vmatpush3.msra.mxu0 %v1716_v28  ;;  %v1721_v41 = vmul.f32 %v3528_v35, %v3434_v6  ;;  %v1139_v5 = vmul.f32 %v2785_v4, %v3474_v18  ;;  %v2055_v6 = vld [vmem:[%s3674_s11] ss:$0 sm:$0xff] }
 0x576   : > { %2612 = vmatpush3.msra.mxu1 %v1734_v30  ;;  %2582 = vmatprep.subr.mxu0 %v1715_v31  ;;  %v1014_v3 = vadd.f32 %v3478_v19, %v2055_v6  ;;  %v1009_v38 = vadd.f32 %v2055_v6, %v3480_v22  ;;  %v1024_v18 = vadd.f32 %v3482_v23, %v2055_v6 }
 0x577   : > { %2613 = vmatprep.subr.mxu1 %v1733_v32  ;;  %2583 = vmatpush3.msra.mxu0 %v1715_v31  ;;  %v1019_v43 = vadd.f32 %v2055_v6, %v3484_v13 }
 0x578   : > { %2614 = vmatpush3.msra.mxu1 %v1733_v32  ;;  %2584 = vmatprep.subr.mxu0 %v1714_v9 }
 0x579   : > { %2615 = vmatprep.subr.mxu1 %v1732_v53  ;;  %2585 = vmatpush3.msra.mxu0 %v1714_v9 }
 0x57a   : > { %2616 = vmatpush3.msra.mxu1 %v1732_v53  ;;  %2586 = vmatprep.subr.mxu0 %v1713_v0 }
 0x57b   : > { %2617 = vmatprep.subr.mxu1 %v1731_v51  ;;  %2587 = vmatpush3.msra.mxu0 %v1713_v0 }
 0x57c   : > { %2618 = vmatpush3.msra.mxu1 %v1731_v51  ;;  %2588 = vmatprep.subr.mxu0 %v1712_v55 }
 0x57d   : > { %2619 = vmatprep.subr.mxu1 %v1730_v54  ;;  %2589 = vmatpush3.msra.mxu0 %v1712_v55 }
 0x57e   : > { %2620 = vmatpush3.msra.mxu1 %v1730_v54  ;;  %2590 = vmatprep.subr.mxu0 %v1711_v56 }
 0x57f   : > { %2621 = vmatprep.subr.mxu1 %v1729_v46  ;;  %2591 = vmatpush3.msra.mxu0 %v1711_v56 }
 0x580   : > { %2622 = vmatpush3.msra.mxu1 %v1729_v46  ;;  %2592 = vmatprep.subr.mxu0 %v1710_v57 }
 0x581   : > { %2623 = vmatprep.subr.mxu1 %v1728_v48  ;;  %2593 = vmatpush3.msra.mxu0 %v1710_v57 }
 0x582   : > { %2624 = vmatpush3.msra.mxu1 %v1728_v48  ;;  %2594 = vmatprep.subr.mxu0 %v1709_v2 }
 0x583   : > { %2625 = vmatprep.subr.mxu1 %v1727_v58  ;;  %2595 = vmatpush3.msra.mxu0 %v1709_v2 }
 0x584   : > { %2626 = vmatpush3.msra.mxu1 %v1727_v58  ;;  %2596 = vmatprep.subr.mxu0 %v1708_v50 }
 0x585   : > { %2627 = vmatprep.subr.mxu1 %v1726_v59  ;;  %2597 = vmatpush3.msra.mxu0 %v1708_v50 }
 0x586   : > { %2628 = vmatpush3.msra.mxu1 %v1726_v59  ;;  %2598 = vmatprep.subr.mxu0 %v1707_v39 }
 0x587   : > { %2629 = vmatprep.subr.mxu1 %v1725_v60  ;;  %2599 = vmatpush3.msra.mxu0 %v1707_v39 }
 0x588   : > { %2630 = vmatpush3.msra.mxu1 %v1725_v60  ;;  %2600 = vmatprep.subr.mxu0 %v1706_v10 }
 0x589   : > { %2631 = vmatprep.subr.mxu1 %v1724_v61  ;;  %2601 = vmatpush3.msra.mxu0 %v1706_v10 }
 0x58a   : > { %2632 = vmatpush3.msra.mxu1 %v1724_v61  ;;  %2602 = vmatprep.subr.mxu0 %v1705_v16 }
 0x58b   : > { %2633 = vmatprep.subr.mxu1 %v1723_v62  ;;  %2603 = vmatpush3.msra.mxu0 %v1705_v16 }
 0x58c   : > { %2634 = vmatpush3.msra.mxu1 %v1723_v62  ;;  %2604 = vmatprep.subr.mxu0 %v1704_v37 }
 0x58d   : > { %2635 = vmatprep.subr.mxu1 %v1722_v63  ;;  %2605 = vmatpush3.msra.mxu0 %v1704_v37 }
 0x58e   : > { %2636 = vmatpush3.msra.mxu1 %v1722_v63  ;;  %2607 = vmatmul.mubr.f32.vlgmr.msra.gmra.mxu0 %v1137_v33 }
 0x58f   : > { %2637 = vmatprep.subr.mxu1 %v1721_v41 }
 0x590   : > { %2638 = vmatpush3.msra.mxu1 %v1721_v41 }
 0x591   : > { %2639 = vmatprep.subr.mxu1 %v1720_v34 }
 0x592   : > { %2640 = vmatpush3.msra.mxu1 %v1720_v34 }
 0x593   : > { %2642 = vmatmul.mubr.f32.vlgmr.msra.gmra.mxu1 %v1139_v5 }
 0x64e   : > { %v2608_v35 = vpop.f32.mrf.mxu0 }
 0x64f   : > { %v1887_v17 = vadd.f32 %v2608_v35, %v1014_v3 }
 0x650   : > { %v1802_v42 = vpop.f32.mrf.mxu0 }
 0x651   : > { %1891 = vst [vmem:[%s505_s13 + $0x8] sm:$0xff] %v1887_v17  ;;  %v1886_v7 = vadd.f32 %v1802_v42, %v1009_v38 }
 0x653   : > { %1890 = vst [vmem:[%s505_s13] sm:$0xff] %v1886_v7  ;;  %v2643_v36 = vpop.f32.mrf.mxu1 }
 0x654   : > { %v1889_v19 = vadd.f32 %v2643_v36, %v1024_v18 }
 0x655   : > { %v1877_v22 = vpop.f32.mrf.mxu1 }
 0x656   : > { %1893 = vst [vmem:[%s505_s13 + $0x18] sm:$0xff] %v1889_v19  ;;  %v1888_v44 = vadd.f32 %v1877_v22, %v1019_v43 }
 0x658   : > { %1892 = vst [vmem:[%s505_s13 + $0x10] sm:$0xff] %v1888_v44 }
 0x659   : > { %2957 = shalt.err (!%p2954_p3)
}
 0x65a   : > { %s2958_s18 = scalar_lea.hbm %s3620_s19, 512  ;;  %s2962_s14 = scalar_lea.hbm %s3675_s12, 1024 }
 0x65b   : > { %p2959_p4 = scmp.ne.s32.totalorder %s3620_s19, %s2958_s18  ;;  %p2963_p2 = scmp.lt.s32.totalorder %s3620_s19, %s3675_s12 }
 0x65c   : > { %p2964_p7 = scmp.lt.s32.totalorder %s2962_s14, %s2958_s18 }
 0x65d   : > { %p2960_p12 = pnand %p2959_p4, %p3710_p11 }
 0x65e   : > { %p2965_p8 = por %p2964_p7, %p2963_p2 }
 0x65f   : > { %p2961_p6 = pneg %p2960_p12 }
 0x661   : > { %p2966_p10 = pnand %p2965_p8, %p2961_p6 }
 0x663   : > { %2969 = shalt.err (!%p2966_p10)
}
 0x664   : > { %s3031_s15 = smov 128   ;;  %s3032_s28 = smov 8  }
 0x665   : > { %2666 = dma.vmem_to_hbm [thread:$0]  (%p3710_p11), %s3615_s4, 512, %s3620_s19, %s1895_s27, %s3031_s15, %s3031_s15, %s3032_s28  }
 0x666 PF: > { %s1924_s20 = sand.u32 1, %s3008_s21   ;;  %p3711_p0 = scmp.ne.s32.totalorder %s3698_s30, 0 }
 0x667   : > { %p3712_p13 = scmp.ge.s32.totalorder %s3020_s24, 2  ;;  %s1925_s1 = scalar_lea.sflag [#allocation4], %s1924_s20 }
 0x669   : > { %p2689_p5 = pnand %p3712_p13, %p3711_p0 }
 0x66b   : > { %p2690_p9 = pneg %p2689_p5 }
 0x66d   : > { %3003 = dma.done.wait (%p2690_p9), %s1925_s1, 512  }
 0x66e   : > { %3005 = vsyncadd (%p2690_p9), %s1925_s1, 4294966784  ;;  %s3713_s26 = sld [smem:[#allocation19_spill]]  ;;  %p28_p1 = scmp.ge.s32.totalorder %s3209_s16, 4  }
 0x66f   : > { %s3714_s21 = smov %s3012_s22  ;;  %s3715_s22 = smov %s3016_s23 }
 0x670   : > { %s3717_s24 = smov %s3209_s16  ;;  %30 = sbr.rel (!%p28_p1) target bundleno = 14 (0xe), region = 133 }
 0x674   : > { %s3716_s23 = smov %s3713_s26 }
 0x675   :  { %1930 = vsyncpa [#allocation3], 1 }
 0x676   :  { %1932 = vsyncpa [#allocation3 + $0x1], 1 }
 0x677   :  { %1933 = vsyncpa [#allocation6], 1 }
 0x678   :  { %1934 = vsyncpa [#allocation9], 1 }
 0x679   :  { %1935 = vsyncpa [#allocation12], 1 }
 0x67a   :  { %1936 = vsyncpa [#allocation4], 1 }
 0x67b   :  { %1938 = vsyncpa [#allocation4 + $0x1], 1 }

</bundles_post_ra>
